<compile_context>
chip_gen: v6e
topology: v6e:2x2x1
jax: 0.10.0
libtpu: 0.0.40
codegen_flags: <defaults>
</compile_context>

<pallas_src>
import numpy as np
import jax
import jax.numpy as jnp
from jax.experimental import pallas as pl
from jax.experimental.pallas import tpu as pltpu

IN_CHANNELS = 16          # C
N_CLASSES = 4
BATCH = 16                # B (training-mode BN stats span the whole batch)
EPS = 1e-5
F32 = jnp.float32
BF16 = jnp.bfloat16

C = IN_CHANNELS
NSL = 5                   # number of y slices matched against x
OCH = 8                   # conv output channels
WCONV = 2 * OCH * C       # 256: [conv1 | conv2] flattened columns per slice
NCGRP = 2 * OCH           # 16 column groups (conv, channel) for BatchNorm2d(8)
D6 = 6 * C                # 96: fused x1..x6 branch width

# ---- packed slab row offsets (shared by host packer and kernel) -------------
# slab A (bf16, 256 lanes): dense conv matrix + group->column broadcast matrix
A_MXY, A_CSELT = 0, 2 * C
A_ROWS = A_CSELT + NCGRP                               # 48 x 256

# slab B (bf16, 96 lanes): lane-padded l1..l6 weights + fused bn1..6 params
B_W1, B_W2, B_W3, B_W456 = 0, NSL * C, 2 * NSL * C, 3 * NSL * C
B_LB = ((4 * NSL * C + 15) // 16) * 16                 # 320 (16-row aligned)
B_BNW, B_BNB = B_LB + 16, B_LB + 32
B_ROWS = B_LB + 48                                     # 368 x 96

# slab C (bf16, 80 lanes): slice-block row selector + within-group sum matrix
C_RT, C_BS = 0, 16
C_ROWS = C_BS + NSL * C                                # 96 x 80
C_LANES = max(NSL * C, NSL * BATCH)

# slab D (bf16, 32 lanes): column selector, cx/fc/fc2/out weights + param rows
D_CSEL, D_WCX = 0, WCONV
D_WFC = 2 * WCONV
D_WFC2 = D_WFC + D6
D_WOUT = D_WFC2 + 2 * C
D_CXB = D_WOUT + C                                     # 656 (16-row aligned)
D_BNCW = D_CXB + 16
D_BNCB = D_BNCW + 16
D_FCB = D_BNCB + 16
D_BN7W = D_FCB + 16
D_BN7B = D_BN7W + 16
D_FC2B = D_BN7B + 16
D_OUTB = D_FC2B + 16
D_ROWS = D_OUTB + 16                                   # 784 x 32


def _lrelu(v):
    # nn.LeakyReLU default negative_slope = 0.01
    return jnp.where(v > 0, v, 0.01 * v)


# ----------------------------------------------------------------------------
# Pallas kernel: the whole forward pass, one invocation, whole arrays in VMEM.
# ----------------------------------------------------------------------------
def exnet_kernel(data_ref, wa_ref, wb_ref, wc_ref, wd_ref, out_ref):
    B = out_ref.shape[0]

    # bf16 operands, f32 accumulation on the MXU; elementwise math stays f32.
    def dot(a, b):
        return jnp.dot(a.astype(BF16), b.astype(BF16), preferred_element_type=F32)

    def prow(ref, row, w):      # single 16-row-aligned parameter row, as f32
        return ref[row:row + 1, 0:w].astype(F32)

    # ---- packed f32 data slab ------------------------------------------------
    xy = data_ref[0:NSL * B, 0:2 * C]                    # (5B, 2C) rows = (k, b)
    yl = data_ref[NSL * B:(NSL + 1) * B, :]              # (B, 5C)
    pss = data_ref[(NSL + 1) * B:(NSL + 2) * B, :]       # (B, 5C) [p|s|zs|0]
    xt = data_ref[(NSL + 2) * B:(NSL + 3) * B, :]        # (B, 5C) x tiled 5x

    # ---- conv c1/c2 of cat([x, y_k]) for all 5 slices: one dense matmul -------
    c12 = dot(xy, wa_ref[A_MXY:A_MXY + 2 * C, :])        # (5B, 256)

    # ---- BatchNorm2d(8) training-mode stats for 5*2*8 = 80 groups, one pass ---
    rt = wc_ref[C_RT:C_RT + NSL, 0:NSL * B]              # (5, 5B) row-block sum
    csel = wd_ref[D_CSEL:D_CSEL + WCONV, 0:NCGRP]        # (256, 16) col -> group
    cselT = wa_ref[A_CSELT:A_CSELT + NCGRP, :]           # (16, 256) group -> col
    inv_n = 1.0 / float(B * C)
    rsum = dot(rt, c12)                                  # (5, 256)
    rsumsq = dot(rt, c12 * c12)                          # (5, 256)
    mu_g = dot(rsum, csel) * inv_n                       # (5, 16)
    ex2_g = dot(rsumsq, csel) * inv_n
    var_g = jnp.maximum(ex2_g - mu_g * mu_g, 0.0)
    a_g = jax.lax.rsqrt(var_g + EPS) * prow(wd_ref, D_BNCW, NCGRP)
    b_g = prow(wd_ref, D_BNCB, NCGRP) - mu_g * a_g
    a_c = dot(a_g, cselT)                                # (5, 256) per-col scale
    b_c = dot(b_g, cselT)                                # (5, 256) per-col bias

    # folded bnc + lrelu, one slice-block (16 rows) at a time
    c12n = jnp.concatenate(
        [_lrelu(c12[k * B:(k + 1) * B, :] * a_c[k:k + 1, :] + b_c[k:k + 1, :])
         for k in range(NSL)], axis=0)                   # (5B, 256)

    # ---- shared dense cx linear, then regroup (5B, C) -> (B, 5C) on lanes -----
    x1s = dot(c12n, wd_ref[D_WCX:D_WCX + WCONV, 0:C]) + prow(wd_ref, D_CXB, C)
    x1f = jnp.concatenate([x1s[k * B:(k + 1) * B, :] for k in range(NSL)],
                          axis=1)                        # (B, 5C)

    # ---- x2 / x3 branches on the (B, 5C) lane layout --------------------------
    x2f = yl - xt
    xs = xt[:, 0:C]
    xx2 = jnp.sum(xs * xs, axis=1, keepdims=True)                     # (B, 1)
    yy2 = dot(yl * yl, wc_ref[C_BS:C_BS + NSL * C, 0:NSL * C])        # (B, 5C)
    x3f = (xt * yl) * jax.lax.rsqrt(xx2 * yy2)

    # ---- l1..l6 into one lane-concatenated (B, 96) slab -----------------------
    pre = (dot(x1f, wb_ref[B_W1:B_W1 + NSL * C, :])
           + dot(x2f, wb_ref[B_W2:B_W2 + NSL * C, :])
           + dot(x3f, wb_ref[B_W3:B_W3 + NSL * C, :])
           + dot(pss, wb_ref[B_W456:B_W456 + NSL * C, :])
           + prow(wb_ref, B_LB, D6))

    def bn_train(v, w, b):      # BatchNorm1d, training mode, biased variance
        mu = jnp.mean(v, axis=0, keepdims=True)
        dv = v - mu
        var = jnp.mean(dv * dv, axis=0, keepdims=True)
        return dv * jax.lax.rsqrt(var + EPS) * w + b

    # fused bn1..bn6 (BN1d is per-column, so lane concatenation is exact)
    slab6 = _lrelu(bn_train(pre, prow(wb_ref, B_BNW, D6),
                            prow(wb_ref, B_BNB, D6)))                 # (B, 96)

    # ---- head: fc -> lrelu -> bn7 -> fc2 -> lrelu -> out ----------------------
    fco = dot(slab6, wd_ref[D_WFC:D_WFC + D6, :]) + prow(wd_ref, D_FCB, 2 * C)
    ui = bn_train(_lrelu(fco), prow(wd_ref, D_BN7W, 2 * C),
                  prow(wd_ref, D_BN7B, 2 * C))
    nx2 = _lrelu(dot(ui, wd_ref[D_WFC2:D_WFC2 + 2 * C, 0:C])
                 + prow(wd_ref, D_FC2B, C))
    out_ref[...] = (dot(nx2, wd_ref[D_WOUT:D_WOUT + C, 0:N_CLASSES])
                    + prow(wd_ref, D_OUTB, N_CLASSES))


# ----------------------------------------------------------------------------
# Host-side weight preprocessing: conv unfolding + packing into bf16 slabs
# ----------------------------------------------------------------------------
def _unfold_conv(w, C):
    """w: (8, 2, K) conv weights (in-ch squeezed).  Returns Mx, My (C, 8C)
    such that conv2d(cat([x, y])) == x @ Mx + y @ My, flattened out_ch-major."""
    O, _, K = w.shape
    pad = (K - 1) // 2
    Mx = np.zeros((C, O * C), np.float32)
    My = np.zeros((C, O * C), np.float32)
    for o in range(O):
        for j in range(C):
            for kw in range(K):
                c = j + kw - pad
                if 0 <= c < C:
                    Mx[c, o * C + j] = w[o, 0, kw]
                    My[c, o * C + j] = w[o, 1, kw]
    return Mx, My


def build_weight_slabs(W):
    f = lambda k: np.asarray(W[k], np.float32)

    M1x, M1y = _unfold_conv(f('c1')[:, 0], C)
    M2x, M2y = _unfold_conv(f('c2')[:, 0], C)
    mxy = np.zeros((2 * C, WCONV), np.float32)           # dense [Mx; My]
    mxy[:C] = np.concatenate([M1x, M2x], axis=1)
    mxy[C:] = np.concatenate([M1y, M2y], axis=1)

    col = np.arange(WCONV)
    grp = col // C                                       # column group = (conv, ch)
    colsel = np.zeros((WCONV, NCGRP), np.float32)
    colsel[col, grp] = 1.0

    # slab A: 256-lane class
    slabA = np.zeros((A_ROWS, WCONV), np.float32)
    slabA[A_MXY:A_MXY + 2 * C] = mxy
    slabA[A_CSELT:A_CSELT + NCGRP] = colsel.T

    # slab B: 96-lane class (lane-padded l1..l6 weights + fused BN params)
    slabB = np.zeros((B_ROWS, D6), np.float32)
    slabB[B_W1:B_W1 + NSL * C, 0:C] = f('l1_w').T
    slabB[B_W2:B_W2 + NSL * C, C:2 * C] = f('l2_w').T
    slabB[B_W3:B_W3 + NSL * C, 2 * C:3 * C] = f('l3_w').T
    slabB[B_W456:B_W456 + 15, 3 * C:4 * C] = f('l4_w').T
    slabB[B_W456 + 15:B_W456 + 45, 4 * C:5 * C] = f('l5_w').T
    slabB[B_W456 + 45:B_W456 + 75, 5 * C:6 * C] = f('l6_w').T
    slabB[B_LB] = np.concatenate([f(f'l{i}_b') for i in range(1, 7)])
    slabB[B_BNW] = np.concatenate([f(f'bn{i}_w') for i in range(1, 7)])
    slabB[B_BNB] = np.concatenate([f(f'bn{i}_b') for i in range(1, 7)])

    # slab C: 80-lane class (0/1 selectors, exact in bf16)
    slabC = np.zeros((C_ROWS, C_LANES), np.float32)
    slabC[C_RT:C_RT + NSL, 0:NSL * BATCH] = np.kron(
        np.eye(NSL, dtype=np.float32), np.ones((1, BATCH), np.float32))
    slabC[C_BS:C_BS + NSL * C, 0:NSL * C] = np.kron(
        np.eye(NSL, dtype=np.float32), np.ones((C, C), np.float32))

    # slab D: 32-lane head class
    slabD = np.zeros((D_ROWS, 2 * C), np.float32)
    slabD[D_CSEL:D_CSEL + WCONV, 0:NCGRP] = colsel
    slabD[D_WCX:D_WCX + WCONV, 0:C] = f('cx_w').T
    slabD[D_WFC:D_WFC + D6] = f('fc_w').T
    slabD[D_WFC2:D_WFC2 + 2 * C, 0:C] = f('fc2_w').T
    slabD[D_WOUT:D_WOUT + C, 0:N_CLASSES] = f('out_w').T
    slabD[D_CXB, 0:C] = f('cx_b')
    slabD[D_BNCW, 0:NCGRP] = np.tile(f('bnc_w'), 2)      # group g -> bnc_w[g % 8]
    slabD[D_BNCB, 0:NCGRP] = np.tile(f('bnc_b'), 2)
    slabD[D_FCB] = f('fc_b')
    slabD[D_BN7W] = f('bn7_w')
    slabD[D_BN7B] = f('bn7_b')
    slabD[D_FC2B, 0:C] = f('fc2_b')
    slabD[D_OUTB, 0:N_CLASSES] = f('out_b')

    return [jnp.asarray(a, dtype=BF16) for a in (slabA, slabB, slabC, slabD)]


def build_data_slab(x, y, p, s, zs):
    B = x.shape[0]
    x2d = x[:, 0, :].astype(F32)                                    # (B, C)
    y2d = y.reshape(B, NSL * C).astype(F32)                         # (B, 5C)
    pss = jnp.concatenate(
        [p.reshape(B, -1).astype(F32), s.reshape(B, -1).astype(F32),
         zs.reshape(B, -1).astype(F32),
         jnp.zeros((B, NSL * C - 75), F32)], axis=1)                # (B, 5C)
    xt = jnp.tile(x2d, (1, NSL))                                    # (B, 5C)
    # conv-input slab: row k*B + b = [x_b | y_{b,k}], lane-padded to 5C
    xk = jnp.tile(x2d, (NSL, 1))                                    # (5B, C)
    yk = jnp.transpose(y.astype(F32), (1, 0, 2)).reshape(NSL * B, C)
    xy = jnp.pad(jnp.concatenate([xk, yk], axis=1),
                 ((0, 0), (0, NSL * C - 2 * C)))                    # (5B, 5C)
    return jnp.concatenate([xy, y2d, pss, xt], axis=0)              # ((5+3)B, 5C)


def exnet_forward(x, y, p, s, zs, W):
    B = x.shape[0]
    args = [build_data_slab(x, y, p, s, zs)] + build_weight_slabs(W)
    vspec = pl.BlockSpec(memory_space=pltpu.MemorySpace.VMEM)
    return pl.pallas_call(
        exnet_kernel,
        out_shape=jax.ShapeDtypeStruct((B, N_CLASSES), F32),
        in_specs=[vspec] * len(args),
        out_specs=vspec,
        cost_estimate=pl.CostEstimate(flops=4_000_000, transcendentals=1_500,
                                      bytes_accessed=250_000),
    )(*args)


# ----------------------------------------------------------------------------
# Pure-JAX reference (mirrors the PyTorch forward) for a correctness check
# ----------------------------------------------------------------------------
def reference_forward(x, y, p, s, zs, W):
    B = x.shape[0]

    def bn1d(v, w, b):
        mu = jnp.mean(v, axis=0)
        var = jnp.mean((v - mu) ** 2, axis=0)
        return (v - mu) / jnp.sqrt(var + EPS) * w + b

    def bn2d(v, w, b):
        mu = jnp.mean(v, axis=(0, 2, 3), keepdims=True)
        var = jnp.mean((v - mu) ** 2, axis=(0, 2, 3), keepdims=True)
        return ((v - mu) / jnp.sqrt(var + EPS)
                * w[None, :, None, None] + b[None, :, None, None])

    def conv2d(u, w, padw):
        return jax.lax.conv_general_dilated(
            u, w, (1, 1), ((0, 0), (padw, padw)),
            dimension_numbers=('NCHW', 'OIHW', 'NCHW'))

    def cx_block(xk):                       # xk: (B, 2, C)
        u = xk[:, None, :, :]
        a = _lrelu(bn2d(conv2d(u, W['c1'], 2), W['bnc_w'], W['bnc_b']))
        bb = _lrelu(bn2d(conv2d(u, W['c2'], 1), W['bnc_w'], W['bnc_b']))
        cat = jnp.concatenate([a, bb], axis=1).reshape(B, -1)
        return cat @ W['cx_w'].T + W['cx_b']

    x0 = [cx_block(jnp.concatenate([x, y[:, k:k + 1]], axis=1)) for k in range(5)]
    x1 = jnp.concatenate(x0, axis=1)
    x2 = (y - x).reshape(B, -1)
    xx = jnp.sqrt((x * x).sum(2))
    yy = jnp.sqrt((y * y).sum(2))
    x3 = ((x * y) / (xx * yy)[..., None]).reshape(B, -1)
    x4 = p.reshape(B, -1)
    x5 = s.reshape(B, -1)
    x6 = zs.reshape(B, -1)

    x1 = _lrelu(bn1d(x1 @ W['l1_w'].T + W['l1_b'], W['bn1_w'], W['bn1_b']))
    x2 = _lrelu(bn1d(x2 @ W['l2_w'].T + W['l2_b'], W['bn2_w'], W['bn2_b']))
    x3 = _lrelu(bn1d(x3 @ W['l3_w'].T + W['l3_b'], W['bn3_w'], W['bn3_b']))
    x4 = _lrelu(bn1d(x4 @ W['l4_w'].T + W['l4_b'], W['bn4_w'], W['bn4_b']))
    x5 = _lrelu(bn1d(x5 @ W['l5_w'].T + W['l5_b'], W['bn5_w'], W['bn5_b']))
    x6 = _lrelu(bn1d(x6 @ W['l6_w'].T + W['l6_b'], W['bn6_w'], W['bn6_b']))

    nx = jnp.concatenate([x1, x2, x3, x4, x5, x6], axis=1)
    ui = bn1d(_lrelu(nx @ W['fc_w'].T + W['fc_b']), W['bn7_w'], W['bn7_b'])
    nx = _lrelu(ui @ W['fc2_w'].T + W['fc2_b'])
    return nx @ W['out_w'].T + W['out_b']


# ----------------------------------------------------------------------------
if __name__ == "__main__":
    Cc, NC, B = IN_CHANNELS, N_CLASSES, BATCH
    keys = jax.random.split(jax.random.PRNGKey(0), 64)
    _ki = iter(range(64))

    def nrm(shape, scale=0.1):
        return jax.random.normal(keys[next(_ki)], shape, dtype=jnp.float32) * scale

    W = {
        'c1': nrm((8, 1, 2, 5)), 'c2': nrm((8, 1, 2, 3)),
        'bnc_w': 1.0 + nrm((8,)), 'bnc_b': nrm((8,)),
        'cx_w': nrm((Cc, 16 * Cc)), 'cx_b': nrm((Cc,)),
        'l1_w': nrm((Cc, 5 * Cc)), 'l1_b': nrm((Cc,)),
        'l2_w': nrm((Cc, 5 * Cc)), 'l2_b': nrm((Cc,)),
        'l3_w': nrm((Cc, 5 * Cc)), 'l3_b': nrm((Cc,)),
        'l4_w': nrm((Cc, 15)), 'l4_b': nrm((Cc,)),
        'l5_w': nrm((Cc, 30)), 'l5_b': nrm((Cc,)),
        'l6_w': nrm((Cc, 30)), 'l6_b': nrm((Cc,)),
    }
    for i in range(1, 7):
        W[f'bn{i}_w'] = 1.0 + nrm((Cc,))
    for i in range(1, 7):
        W[f'bn{i}_b'] = nrm((Cc,))
    W.update({
        'bn7_w': 1.0 + nrm((2 * Cc,)), 'bn7_b': nrm((2 * Cc,)),
        'fc_w': nrm((2 * Cc, 6 * Cc)), 'fc_b': nrm((2 * Cc,)),
        'fc2_w': nrm((Cc, 2 * Cc)), 'fc2_b': nrm((Cc,)),
        'out_w': nrm((NC, Cc)), 'out_b': nrm((NC,)),
    })

    x = jax.random.normal(keys[next(_ki)], (B, 1, Cc), dtype=jnp.float32)
    y = jax.random.normal(keys[next(_ki)], (B, 5, Cc), dtype=jnp.float32)
    p = jax.random.normal(keys[next(_ki)], (B, 5, 3), dtype=jnp.float32)
    s = jax.random.normal(keys[next(_ki)], (B, 5, 6), dtype=jnp.float32)
    zs = jax.random.normal(keys[next(_ki)], (B, 5, 6), dtype=jnp.float32)

    out = jax.block_until_ready(exnet_forward(x, y, p, s, zs, W))
    ref = jax.block_until_ready(reference_forward(x, y, p, s, zs, W))
    assert out.shape == (B, NC)
    assert bool(jnp.allclose(out, ref, rtol=5e-2, atol=5e-2)), "mismatch vs reference"

    print("KERNEL_OK")
</pallas_src>

<mosaic_0001>
module attributes {stable_mosaic.version = 11 : i64} {
  func.func @exnet_kernel(%arg0: memref<128x80xf32, #tpu.memory_space<vmem>>, %arg1: memref<48x256xbf16, #tpu.memory_space<vmem>>, %arg2: memref<368x96xbf16, #tpu.memory_space<vmem>>, %arg3: memref<96x80xbf16, #tpu.memory_space<vmem>>, %arg4: memref<784x32xbf16, #tpu.memory_space<vmem>>, %arg5: memref<16x4xf32, #tpu.memory_space<vmem>>) attributes {dimension_semantics = [], scalar_prefetch = 0 : i64, scratch_operands = 0 : i64, tpu.core_type = #tpu.core_type<tc>} {
    %c0 = arith.constant 0 : index
    %c0_0 = arith.constant 0 : index
    %0 = vector.load %arg0[%c0, %c0_0] : memref<128x80xf32, #tpu.memory_space<vmem>>, vector<80x32xf32>
    %c80 = arith.constant 80 : index
    %c0_1 = arith.constant 0 : index
    %1 = vector.load %arg0[%c80, %c0_1] : memref<128x80xf32, #tpu.memory_space<vmem>>, vector<16x80xf32>
    %c96 = arith.constant 96 : index
    %c0_2 = arith.constant 0 : index
    %2 = vector.load %arg0[%c96, %c0_2] : memref<128x80xf32, #tpu.memory_space<vmem>>, vector<16x80xf32>
    %c112 = arith.constant 112 : index
    %c0_3 = arith.constant 0 : index
    %3 = vector.load %arg0[%c112, %c0_3] : memref<128x80xf32, #tpu.memory_space<vmem>>, vector<16x80xf32>
    %c0_4 = arith.constant 0 : index
    %c0_5 = arith.constant 0 : index
    %4 = vector.load %arg1[%c0_4, %c0_5] : memref<48x256xbf16, #tpu.memory_space<vmem>>, vector<32x256xbf16>
    %5 = arith.truncf %0 : vector<80x32xf32> to vector<80x32xbf16>
    %cst = arith.constant dense<0.000000e+00> : vector<80x256xf32>
    %6 = tpu.matmul %5, %4, %cst {dimension_numbers = #tpu.dot_dimension_numbers<[1], [0], [0], [1], [0, 0, 1, 1], [], []>} : vector<80x32xbf16>, vector<32x256xbf16>, vector<80x256xf32> -> vector<80x256xf32>
    %c0_6 = arith.constant 0 : index
    %c0_7 = arith.constant 0 : index
    %7 = vector.load %arg3[%c0_6, %c0_7] : memref<96x80xbf16, #tpu.memory_space<vmem>>, vector<5x80xbf16>
    %c0_8 = arith.constant 0 : index
    %c0_9 = arith.constant 0 : index
    %8 = vector.load %arg4[%c0_8, %c0_9] : memref<784x32xbf16, #tpu.memory_space<vmem>>, vector<256x16xbf16>
    %c32 = arith.constant 32 : index
    %c0_10 = arith.constant 0 : index
    %9 = vector.load %arg1[%c32, %c0_10] : memref<48x256xbf16, #tpu.memory_space<vmem>>, vector<16x256xbf16>
    %10 = arith.truncf %6 : vector<80x256xf32> to vector<80x256xbf16>
    %cst_11 = arith.constant dense<0.000000e+00> : vector<5x256xf32>
    %11 = tpu.matmul %7, %10, %cst_11 {dimension_numbers = #tpu.dot_dimension_numbers<[1], [0], [0], [1], [0, 0, 1, 1], [], []>} : vector<5x80xbf16>, vector<80x256xbf16>, vector<5x256xf32> -> vector<5x256xf32>
    %12 = arith.mulf %6, %6 : vector<80x256xf32>
    %13 = arith.truncf %12 : vector<80x256xf32> to vector<80x256xbf16>
    %cst_12 = arith.constant dense<0.000000e+00> : vector<5x256xf32>
    %14 = tpu.matmul %7, %13, %cst_12 {dimension_numbers = #tpu.dot_dimension_numbers<[1], [0], [0], [1], [0, 0, 1, 1], [], []>} : vector<5x80xbf16>, vector<80x256xbf16>, vector<5x256xf32> -> vector<5x256xf32>
    %15 = arith.truncf %11 : vector<5x256xf32> to vector<5x256xbf16>
    %cst_13 = arith.constant dense<0.000000e+00> : vector<5x16xf32>
    %16 = tpu.matmul %15, %8, %cst_13 {dimension_numbers = #tpu.dot_dimension_numbers<[1], [0], [0], [1], [0, 0, 1, 1], [], []>} : vector<5x256xbf16>, vector<256x16xbf16>, vector<5x16xf32> -> vector<5x16xf32>
    %cst_14 = arith.constant 3.906250e-03 : f32
    %17 = vector.broadcast %cst_14 : f32 to vector<5x16xf32>
    %18 = arith.mulf %16, %17 : vector<5x16xf32>
    %19 = arith.truncf %14 : vector<5x256xf32> to vector<5x256xbf16>
    %cst_15 = arith.constant dense<0.000000e+00> : vector<5x16xf32>
    %20 = tpu.matmul %19, %8, %cst_15 {dimension_numbers = #tpu.dot_dimension_numbers<[1], [0], [0], [1], [0, 0, 1, 1], [], []>} : vector<5x256xbf16>, vector<256x16xbf16>, vector<5x16xf32> -> vector<5x16xf32>
    %cst_16 = arith.constant 3.906250e-03 : f32
    %21 = vector.broadcast %cst_16 : f32 to vector<5x16xf32>
    %22 = arith.mulf %20, %21 : vector<5x16xf32>
    %23 = arith.mulf %18, %18 : vector<5x16xf32>
    %24 = arith.subf %22, %23 : vector<5x16xf32>
    %cst_17 = arith.constant 0.000000e+00 : f32
    %25 = vector.broadcast %cst_17 : f32 to vector<5x16xf32>
    %26 = arith.maximumf %24, %25 : vector<5x16xf32>
    %cst_18 = arith.constant 9.99999974E-6 : f32
    %27 = vector.broadcast %cst_18 : f32 to vector<5x16xf32>
    %28 = arith.addf %26, %27 : vector<5x16xf32>
    %29 = math.rsqrt %28 : vector<5x16xf32>
    %c672 = arith.constant 672 : index
    %c0_19 = arith.constant 0 : index
    %30 = vector.load %arg4[%c672, %c0_19] : memref<784x32xbf16, #tpu.memory_space<vmem>>, vector<1x16xbf16>
    %31 = arith.extf %30 : vector<1x16xbf16> to vector<1x16xf32>
    %32 = vector.broadcast %31 : vector<1x16xf32> to vector<5x16xf32>
    %33 = arith.mulf %29, %32 : vector<5x16xf32>
    %c688 = arith.constant 688 : index
    %c0_20 = arith.constant 0 : index
    %34 = vector.load %arg4[%c688, %c0_20] : memref<784x32xbf16, #tpu.memory_space<vmem>>, vector<1x16xbf16>
    %35 = arith.extf %34 : vector<1x16xbf16> to vector<1x16xf32>
    %36 = arith.mulf %18, %33 : vector<5x16xf32>
    %37 = vector.broadcast %35 : vector<1x16xf32> to vector<5x16xf32>
    %38 = arith.subf %37, %36 : vector<5x16xf32>
    %39 = arith.truncf %33 : vector<5x16xf32> to vector<5x16xbf16>
    %cst_21 = arith.constant dense<0.000000e+00> : vector<5x256xf32>
    %40 = tpu.matmul %39, %9, %cst_21 {dimension_numbers = #tpu.dot_dimension_numbers<[1], [0], [0], [1], [0, 0, 1, 1], [], []>} : vector<5x16xbf16>, vector<16x256xbf16>, vector<5x256xf32> -> vector<5x256xf32>
    %41 = arith.truncf %38 : vector<5x16xf32> to vector<5x16xbf16>
    %cst_22 = arith.constant dense<0.000000e+00> : vector<5x256xf32>
    %42 = tpu.matmul %41, %9, %cst_22 {dimension_numbers = #tpu.dot_dimension_numbers<[1], [0], [0], [1], [0, 0, 1, 1], [], []>} : vector<5x16xbf16>, vector<16x256xbf16>, vector<5x256xf32> -> vector<5x256xf32>
    %43 = vector.extract_strided_slice %6 {offsets = [0, 0], sizes = [16, 256], strides = [1, 1]} : vector<80x256xf32> to vector<16x256xf32>
    %44 = vector.extract_strided_slice %40 {offsets = [0, 0], sizes = [1, 256], strides = [1, 1]} : vector<5x256xf32> to vector<1x256xf32>
    %45 = vector.broadcast %44 : vector<1x256xf32> to vector<16x256xf32>
    %46 = arith.mulf %43, %45 : vector<16x256xf32>
    %47 = vector.extract_strided_slice %42 {offsets = [0, 0], sizes = [1, 256], strides = [1, 1]} : vector<5x256xf32> to vector<1x256xf32>
    %48 = vector.broadcast %47 : vector<1x256xf32> to vector<16x256xf32>
    %49 = arith.addf %46, %48 : vector<16x256xf32>
    %cst_23 = arith.constant 0.000000e+00 : f32
    %50 = vector.broadcast %cst_23 : f32 to vector<16x256xf32>
    %51 = arith.cmpf ogt, %49, %50 : vector<16x256xf32>
    %cst_24 = arith.constant 0.00999999977 : f32
    %52 = vector.broadcast %cst_24 : f32 to vector<16x256xf32>
    %53 = arith.mulf %52, %49 : vector<16x256xf32>
    %54 = arith.select %51, %49, %53 : vector<16x256xi1>, vector<16x256xf32>
    %55 = vector.extract_strided_slice %6 {offsets = [16, 0], sizes = [16, 256], strides = [1, 1]} : vector<80x256xf32> to vector<16x256xf32>
    %56 = vector.extract_strided_slice %40 {offsets = [1, 0], sizes = [1, 256], strides = [1, 1]} : vector<5x256xf32> to vector<1x256xf32>
    %57 = vector.broadcast %56 : vector<1x256xf32> to vector<16x256xf32>
    %58 = arith.mulf %55, %57 : vector<16x256xf32>
    %59 = vector.extract_strided_slice %42 {offsets = [1, 0], sizes = [1, 256], strides = [1, 1]} : vector<5x256xf32> to vector<1x256xf32>
    %60 = vector.broadcast %59 : vector<1x256xf32> to vector<16x256xf32>
    %61 = arith.addf %58, %60 : vector<16x256xf32>
    %cst_25 = arith.constant 0.000000e+00 : f32
    %62 = vector.broadcast %cst_25 : f32 to vector<16x256xf32>
    %63 = arith.cmpf ogt, %61, %62 : vector<16x256xf32>
    %cst_26 = arith.constant 0.00999999977 : f32
    %64 = vector.broadcast %cst_26 : f32 to vector<16x256xf32>
    %65 = arith.mulf %64, %61 : vector<16x256xf32>
    %66 = arith.select %63, %61, %65 : vector<16x256xi1>, vector<16x256xf32>
    %67 = vector.extract_strided_slice %6 {offsets = [32, 0], sizes = [16, 256], strides = [1, 1]} : vector<80x256xf32> to vector<16x256xf32>
    %68 = vector.extract_strided_slice %40 {offsets = [2, 0], sizes = [1, 256], strides = [1, 1]} : vector<5x256xf32> to vector<1x256xf32>
    %69 = vector.broadcast %68 : vector<1x256xf32> to vector<16x256xf32>
    %70 = arith.mulf %67, %69 : vector<16x256xf32>
    %71 = vector.extract_strided_slice %42 {offsets = [2, 0], sizes = [1, 256], strides = [1, 1]} : vector<5x256xf32> to vector<1x256xf32>
    %72 = vector.broadcast %71 : vector<1x256xf32> to vector<16x256xf32>
    %73 = arith.addf %70, %72 : vector<16x256xf32>
    %cst_27 = arith.constant 0.000000e+00 : f32
    %74 = vector.broadcast %cst_27 : f32 to vector<16x256xf32>
    %75 = arith.cmpf ogt, %73, %74 : vector<16x256xf32>
    %cst_28 = arith.constant 0.00999999977 : f32
    %76 = vector.broadcast %cst_28 : f32 to vector<16x256xf32>
    %77 = arith.mulf %76, %73 : vector<16x256xf32>
    %78 = arith.select %75, %73, %77 : vector<16x256xi1>, vector<16x256xf32>
    %79 = vector.extract_strided_slice %6 {offsets = [48, 0], sizes = [16, 256], strides = [1, 1]} : vector<80x256xf32> to vector<16x256xf32>
    %80 = vector.extract_strided_slice %40 {offsets = [3, 0], sizes = [1, 256], strides = [1, 1]} : vector<5x256xf32> to vector<1x256xf32>
    %81 = vector.broadcast %80 : vector<1x256xf32> to vector<16x256xf32>
    %82 = arith.mulf %79, %81 : vector<16x256xf32>
    %83 = vector.extract_strided_slice %42 {offsets = [3, 0], sizes = [1, 256], strides = [1, 1]} : vector<5x256xf32> to vector<1x256xf32>
    %84 = vector.broadcast %83 : vector<1x256xf32> to vector<16x256xf32>
    %85 = arith.addf %82, %84 : vector<16x256xf32>
    %cst_29 = arith.constant 0.000000e+00 : f32
    %86 = vector.broadcast %cst_29 : f32 to vector<16x256xf32>
    %87 = arith.cmpf ogt, %85, %86 : vector<16x256xf32>
    %cst_30 = arith.constant 0.00999999977 : f32
    %88 = vector.broadcast %cst_30 : f32 to vector<16x256xf32>
    %89 = arith.mulf %88, %85 : vector<16x256xf32>
    %90 = arith.select %87, %85, %89 : vector<16x256xi1>, vector<16x256xf32>
    %91 = vector.extract_strided_slice %6 {offsets = [64, 0], sizes = [16, 256], strides = [1, 1]} : vector<80x256xf32> to vector<16x256xf32>
    %92 = vector.extract_strided_slice %40 {offsets = [4, 0], sizes = [1, 256], strides = [1, 1]} : vector<5x256xf32> to vector<1x256xf32>
    %93 = vector.broadcast %92 : vector<1x256xf32> to vector<16x256xf32>
    %94 = arith.mulf %91, %93 : vector<16x256xf32>
    %95 = vector.extract_strided_slice %42 {offsets = [4, 0], sizes = [1, 256], strides = [1, 1]} : vector<5x256xf32> to vector<1x256xf32>
    %96 = vector.broadcast %95 : vector<1x256xf32> to vector<16x256xf32>
    %97 = arith.addf %94, %96 : vector<16x256xf32>
    %cst_31 = arith.constant 0.000000e+00 : f32
    %98 = vector.broadcast %cst_31 : f32 to vector<16x256xf32>
    %99 = arith.cmpf ogt, %97, %98 : vector<16x256xf32>
    %cst_32 = arith.constant 0.00999999977 : f32
    %100 = vector.broadcast %cst_32 : f32 to vector<16x256xf32>
    %101 = arith.mulf %100, %97 : vector<16x256xf32>
    %102 = arith.select %99, %97, %101 : vector<16x256xi1>, vector<16x256xf32>
    %103 = tpu.concatenate %54, %66, %78, %90, %102 in 0 : vector<16x256xf32>, vector<16x256xf32>, vector<16x256xf32>, vector<16x256xf32>, vector<16x256xf32> -> vector<80x256xf32>
    %c256 = arith.constant 256 : index
    %c0_33 = arith.constant 0 : index
    %104 = vector.load %arg4[%c256, %c0_33] : memref<784x32xbf16, #tpu.memory_space<vmem>>, vector<256x16xbf16>
    %105 = arith.truncf %103 : vector<80x256xf32> to vector<80x256xbf16>
    %cst_34 = arith.constant dense<0.000000e+00> : vector<80x16xf32>
    %106 = tpu.matmul %105, %104, %cst_34 {dimension_numbers = #tpu.dot_dimension_numbers<[1], [0], [0], [1], [0, 0, 1, 1], [], []>} : vector<80x256xbf16>, vector<256x16xbf16>, vector<80x16xf32> -> vector<80x16xf32>
    %c656 = arith.constant 656 : index
    %c0_35 = arith.constant 0 : index
    %107 = vector.load %arg4[%c656, %c0_35] : memref<784x32xbf16, #tpu.memory_space<vmem>>, vector<1x16xbf16>
    %108 = arith.extf %107 : vector<1x16xbf16> to vector<1x16xf32>
    %109 = vector.broadcast %108 : vector<1x16xf32> to vector<80x16xf32>
    %110 = arith.addf %106, %109 : vector<80x16xf32>
    %111 = vector.extract_strided_slice %110 {offsets = [0, 0], sizes = [16, 16], strides = [1, 1]} : vector<80x16xf32> to vector<16x16xf32>
    %112 = vector.extract_strided_slice %110 {offsets = [16, 0], sizes = [16, 16], strides = [1, 1]} : vector<80x16xf32> to vector<16x16xf32>
    %113 = vector.extract_strided_slice %110 {offsets = [32, 0], sizes = [16, 16], strides = [1, 1]} : vector<80x16xf32> to vector<16x16xf32>
    %114 = vector.extract_strided_slice %110 {offsets = [48, 0], sizes = [16, 16], strides = [1, 1]} : vector<80x16xf32> to vector<16x16xf32>
    %115 = vector.extract_strided_slice %110 {offsets = [64, 0], sizes = [16, 16], strides = [1, 1]} : vector<80x16xf32> to vector<16x16xf32>
    %116 = tpu.concatenate %111, %112, %113, %114, %115 in 1 : vector<16x16xf32>, vector<16x16xf32>, vector<16x16xf32>, vector<16x16xf32>, vector<16x16xf32> -> vector<16x80xf32>
    %117 = arith.subf %1, %3 : vector<16x80xf32>
    %118 = vector.extract_strided_slice %3 {offsets = [0, 0], sizes = [16, 16], strides = [1, 1]} : vector<16x80xf32> to vector<16x16xf32>
    %119 = arith.mulf %118, %118 : vector<16x16xf32>
    %cst_36 = arith.constant dense<0.000000e+00> : vector<16xf32>
    %120 = vector.multi_reduction <add>, %119, %cst_36 [1] : vector<16x16xf32> to vector<16xf32>
    %121 = vector.shape_cast %120 : vector<16xf32> to vector<16x1xf32>
    %122 = arith.mulf %1, %1 : vector<16x80xf32>
    %c16 = arith.constant 16 : index
    %c0_37 = arith.constant 0 : index
    %123 = vector.load %arg3[%c16, %c0_37] : memref<96x80xbf16, #tpu.memory_space<vmem>>, vector<80x80xbf16>
    %124 = arith.truncf %122 : vector<16x80xf32> to vector<16x80xbf16>
    %cst_38 = arith.constant dense<0.000000e+00> : vector<16x80xf32>
    %125 = tpu.matmul %124, %123, %cst_38 {dimension_numbers = #tpu.dot_dimension_numbers<[1], [0], [0], [1], [0, 0, 1, 1], [], []>} : vector<16x80xbf16>, vector<80x80xbf16>, vector<16x80xf32> -> vector<16x80xf32>
    %126 = arith.mulf %3, %1 : vector<16x80xf32>
    %127 = vector.broadcast %121 : vector<16x1xf32> to vector<16x80xf32>
    %128 = arith.mulf %127, %125 : vector<16x80xf32>
    %129 = math.rsqrt %128 : vector<16x80xf32>
    %130 = arith.mulf %126, %129 : vector<16x80xf32>
    %c0_39 = arith.constant 0 : index
    %c0_40 = arith.constant 0 : index
    %131 = vector.load %arg2[%c0_39, %c0_40] : memref<368x96xbf16, #tpu.memory_space<vmem>>, vector<80x96xbf16>
    %132 = arith.truncf %116 : vector<16x80xf32> to vector<16x80xbf16>
    %cst_41 = arith.constant dense<0.000000e+00> : vector<16x96xf32>
    %133 = tpu.matmul %132, %131, %cst_41 {dimension_numbers = #tpu.dot_dimension_numbers<[1], [0], [0], [1], [0, 0, 1, 1], [], []>} : vector<16x80xbf16>, vector<80x96xbf16>, vector<16x96xf32> -> vector<16x96xf32>
    %c80_42 = arith.constant 80 : index
    %c0_43 = arith.constant 0 : index
    %134 = vector.load %arg2[%c80_42, %c0_43] : memref<368x96xbf16, #tpu.memory_space<vmem>>, vector<80x96xbf16>
    %135 = arith.truncf %117 : vector<16x80xf32> to vector<16x80xbf16>
    %cst_44 = arith.constant dense<0.000000e+00> : vector<16x96xf32>
    %136 = tpu.matmul %135, %134, %cst_44 {dimension_numbers = #tpu.dot_dimension_numbers<[1], [0], [0], [1], [0, 0, 1, 1], [], []>} : vector<16x80xbf16>, vector<80x96xbf16>, vector<16x96xf32> -> vector<16x96xf32>
    %137 = arith.addf %133, %136 : vector<16x96xf32>
    %c160 = arith.constant 160 : index
    %c0_45 = arith.constant 0 : index
    %138 = vector.load %arg2[%c160, %c0_45] : memref<368x96xbf16, #tpu.memory_space<vmem>>, vector<80x96xbf16>
    %139 = arith.truncf %130 : vector<16x80xf32> to vector<16x80xbf16>
    %cst_46 = arith.constant dense<0.000000e+00> : vector<16x96xf32>
    %140 = tpu.matmul %139, %138, %cst_46 {dimension_numbers = #tpu.dot_dimension_numbers<[1], [0], [0], [1], [0, 0, 1, 1], [], []>} : vector<16x80xbf16>, vector<80x96xbf16>, vector<16x96xf32> -> vector<16x96xf32>
    %141 = arith.addf %137, %140 : vector<16x96xf32>
    %c240 = arith.constant 240 : index
    %c0_47 = arith.constant 0 : index
    %142 = vector.load %arg2[%c240, %c0_47] : memref<368x96xbf16, #tpu.memory_space<vmem>>, vector<80x96xbf16>
    %143 = arith.truncf %2 : vector<16x80xf32> to vector<16x80xbf16>
    %cst_48 = arith.constant dense<0.000000e+00> : vector<16x96xf32>
    %144 = tpu.matmul %143, %142, %cst_48 {dimension_numbers = #tpu.dot_dimension_numbers<[1], [0], [0], [1], [0, 0, 1, 1], [], []>} : vector<16x80xbf16>, vector<80x96xbf16>, vector<16x96xf32> -> vector<16x96xf32>
    %145 = arith.addf %141, %144 : vector<16x96xf32>
    %c320 = arith.constant 320 : index
    %c0_49 = arith.constant 0 : index
    %146 = vector.load %arg2[%c320, %c0_49] : memref<368x96xbf16, #tpu.memory_space<vmem>>, vector<1x96xbf16>
    %147 = arith.extf %146 : vector<1x96xbf16> to vector<1x96xf32>
    %148 = vector.broadcast %147 : vector<1x96xf32> to vector<16x96xf32>
    %149 = arith.addf %145, %148 : vector<16x96xf32>
    %c336 = arith.constant 336 : index
    %c0_50 = arith.constant 0 : index
    %150 = vector.load %arg2[%c336, %c0_50] : memref<368x96xbf16, #tpu.memory_space<vmem>>, vector<1x96xbf16>
    %151 = arith.extf %150 : vector<1x96xbf16> to vector<1x96xf32>
    %c352 = arith.constant 352 : index
    %c0_51 = arith.constant 0 : index
    %152 = vector.load %arg2[%c352, %c0_51] : memref<368x96xbf16, #tpu.memory_space<vmem>>, vector<1x96xbf16>
    %153 = arith.extf %152 : vector<1x96xbf16> to vector<1x96xf32>
    %cst_52 = arith.constant dense<0.000000e+00> : vector<96xf32>
    %154 = vector.multi_reduction <add>, %149, %cst_52 [0] : vector<16x96xf32> to vector<96xf32>
    %155 = vector.shape_cast %154 : vector<96xf32> to vector<1x96xf32>
    %cst_53 = arith.constant 1.600000e+01 : f32
    %156 = vector.broadcast %cst_53 : f32 to vector<1x96xf32>
    %157 = arith.divf %155, %156 : vector<1x96xf32>
    %158 = vector.broadcast %157 : vector<1x96xf32> to vector<16x96xf32>
    %159 = arith.subf %149, %158 : vector<16x96xf32>
    %160 = arith.mulf %159, %159 : vector<16x96xf32>
    %cst_54 = arith.constant dense<0.000000e+00> : vector<96xf32>
    %161 = vector.multi_reduction <add>, %160, %cst_54 [0] : vector<16x96xf32> to vector<96xf32>
    %162 = vector.shape_cast %161 : vector<96xf32> to vector<1x96xf32>
    %cst_55 = arith.constant 1.600000e+01 : f32
    %163 = vector.broadcast %cst_55 : f32 to vector<1x96xf32>
    %164 = arith.divf %162, %163 : vector<1x96xf32>
    %cst_56 = arith.constant 9.99999974E-6 : f32
    %165 = vector.broadcast %cst_56 : f32 to vector<1x96xf32>
    %166 = arith.addf %164, %165 : vector<1x96xf32>
    %167 = math.rsqrt %166 : vector<1x96xf32>
    %168 = vector.broadcast %167 : vector<1x96xf32> to vector<16x96xf32>
    %169 = arith.mulf %159, %168 : vector<16x96xf32>
    %170 = vector.broadcast %151 : vector<1x96xf32> to vector<16x96xf32>
    %171 = arith.mulf %169, %170 : vector<16x96xf32>
    %172 = vector.broadcast %153 : vector<1x96xf32> to vector<16x96xf32>
    %173 = arith.addf %171, %172 : vector<16x96xf32>
    %cst_57 = arith.constant 0.000000e+00 : f32
    %174 = vector.broadcast %cst_57 : f32 to vector<16x96xf32>
    %175 = arith.cmpf ogt, %173, %174 : vector<16x96xf32>
    %cst_58 = arith.constant 0.00999999977 : f32
    %176 = vector.broadcast %cst_58 : f32 to vector<16x96xf32>
    %177 = arith.mulf %176, %173 : vector<16x96xf32>
    %178 = arith.select %175, %173, %177 : vector<16x96xi1>, vector<16x96xf32>
    %c512 = arith.constant 512 : index
    %c0_59 = arith.constant 0 : index
    %179 = vector.load %arg4[%c512, %c0_59] : memref<784x32xbf16, #tpu.memory_space<vmem>>, vector<96x32xbf16>
    %180 = arith.truncf %178 : vector<16x96xf32> to vector<16x96xbf16>
    %cst_60 = arith.constant dense<0.000000e+00> : vector<16x32xf32>
    %181 = tpu.matmul %180, %179, %cst_60 {dimension_numbers = #tpu.dot_dimension_numbers<[1], [0], [0], [1], [0, 0, 1, 1], [], []>} : vector<16x96xbf16>, vector<96x32xbf16>, vector<16x32xf32> -> vector<16x32xf32>
    %c704 = arith.constant 704 : index
    %c0_61 = arith.constant 0 : index
    %182 = vector.load %arg4[%c704, %c0_61] : memref<784x32xbf16, #tpu.memory_space<vmem>>, vector<1x32xbf16>
    %183 = arith.extf %182 : vector<1x32xbf16> to vector<1x32xf32>
    %184 = vector.broadcast %183 : vector<1x32xf32> to vector<16x32xf32>
    %185 = arith.addf %181, %184 : vector<16x32xf32>
    %cst_62 = arith.constant 0.000000e+00 : f32
    %186 = vector.broadcast %cst_62 : f32 to vector<16x32xf32>
    %187 = arith.cmpf ogt, %185, %186 : vector<16x32xf32>
    %cst_63 = arith.constant 0.00999999977 : f32
    %188 = vector.broadcast %cst_63 : f32 to vector<16x32xf32>
    %189 = arith.mulf %188, %185 : vector<16x32xf32>
    %190 = arith.select %187, %185, %189 : vector<16x32xi1>, vector<16x32xf32>
    %c720 = arith.constant 720 : index
    %c0_64 = arith.constant 0 : index
    %191 = vector.load %arg4[%c720, %c0_64] : memref<784x32xbf16, #tpu.memory_space<vmem>>, vector<1x32xbf16>
    %192 = arith.extf %191 : vector<1x32xbf16> to vector<1x32xf32>
    %c736 = arith.constant 736 : index
    %c0_65 = arith.constant 0 : index
    %193 = vector.load %arg4[%c736, %c0_65] : memref<784x32xbf16, #tpu.memory_space<vmem>>, vector<1x32xbf16>
    %194 = arith.extf %193 : vector<1x32xbf16> to vector<1x32xf32>
    %cst_66 = arith.constant dense<0.000000e+00> : vector<32xf32>
    %195 = vector.multi_reduction <add>, %190, %cst_66 [0] : vector<16x32xf32> to vector<32xf32>
    %196 = vector.shape_cast %195 : vector<32xf32> to vector<1x32xf32>
    %cst_67 = arith.constant 1.600000e+01 : f32
    %197 = vector.broadcast %cst_67 : f32 to vector<1x32xf32>
    %198 = arith.divf %196, %197 : vector<1x32xf32>
    %199 = vector.broadcast %198 : vector<1x32xf32> to vector<16x32xf32>
    %200 = arith.subf %190, %199 : vector<16x32xf32>
    %201 = arith.mulf %200, %200 : vector<16x32xf32>
    %cst_68 = arith.constant dense<0.000000e+00> : vector<32xf32>
    %202 = vector.multi_reduction <add>, %201, %cst_68 [0] : vector<16x32xf32> to vector<32xf32>
    %203 = vector.shape_cast %202 : vector<32xf32> to vector<1x32xf32>
    %cst_69 = arith.constant 1.600000e+01 : f32
    %204 = vector.broadcast %cst_69 : f32 to vector<1x32xf32>
    %205 = arith.divf %203, %204 : vector<1x32xf32>
    %cst_70 = arith.constant 9.99999974E-6 : f32
    %206 = vector.broadcast %cst_70 : f32 to vector<1x32xf32>
    %207 = arith.addf %205, %206 : vector<1x32xf32>
    %208 = math.rsqrt %207 : vector<1x32xf32>
    %209 = vector.broadcast %208 : vector<1x32xf32> to vector<16x32xf32>
    %210 = arith.mulf %200, %209 : vector<16x32xf32>
    %211 = vector.broadcast %192 : vector<1x32xf32> to vector<16x32xf32>
    %212 = arith.mulf %210, %211 : vector<16x32xf32>
    %213 = vector.broadcast %194 : vector<1x32xf32> to vector<16x32xf32>
    %214 = arith.addf %212, %213 : vector<16x32xf32>
    %c608 = arith.constant 608 : index
    %c0_71 = arith.constant 0 : index
    %215 = vector.load %arg4[%c608, %c0_71] : memref<784x32xbf16, #tpu.memory_space<vmem>>, vector<32x16xbf16>
    %216 = arith.truncf %214 : vector<16x32xf32> to vector<16x32xbf16>
    %cst_72 = arith.constant dense<0.000000e+00> : vector<16x16xf32>
    %217 = tpu.matmul %216, %215, %cst_72 {dimension_numbers = #tpu.dot_dimension_numbers<[1], [0], [0], [1], [0, 0, 1, 1], [], []>} : vector<16x32xbf16>, vector<32x16xbf16>, vector<16x16xf32> -> vector<16x16xf32>
    %c752 = arith.constant 752 : index
    %c0_73 = arith.constant 0 : index
    %218 = vector.load %arg4[%c752, %c0_73] : memref<784x32xbf16, #tpu.memory_space<vmem>>, vector<1x16xbf16>
    %219 = arith.extf %218 : vector<1x16xbf16> to vector<1x16xf32>
    %220 = vector.broadcast %219 : vector<1x16xf32> to vector<16x16xf32>
    %221 = arith.addf %217, %220 : vector<16x16xf32>
    %cst_74 = arith.constant 0.000000e+00 : f32
    %222 = vector.broadcast %cst_74 : f32 to vector<16x16xf32>
    %223 = arith.cmpf ogt, %221, %222 : vector<16x16xf32>
    %cst_75 = arith.constant 0.00999999977 : f32
    %224 = vector.broadcast %cst_75 : f32 to vector<16x16xf32>
    %225 = arith.mulf %224, %221 : vector<16x16xf32>
    %226 = arith.select %223, %221, %225 : vector<16x16xi1>, vector<16x16xf32>
    %c640 = arith.constant 640 : index
    %c0_76 = arith.constant 0 : index
    %227 = vector.load %arg4[%c640, %c0_76] : memref<784x32xbf16, #tpu.memory_space<vmem>>, vector<16x4xbf16>
    %228 = arith.truncf %226 : vector<16x16xf32> to vector<16x16xbf16>
    %cst_77 = arith.constant dense<0.000000e+00> : vector<16x4xf32>
    %229 = tpu.matmul %228, %227, %cst_77 {dimension_numbers = #tpu.dot_dimension_numbers<[1], [0], [0], [1], [0, 0, 1, 1], [], []>} : vector<16x16xbf16>, vector<16x4xbf16>, vector<16x4xf32> -> vector<16x4xf32>
    %c768 = arith.constant 768 : index
    %c0_78 = arith.constant 0 : index
    %230 = vector.load %arg4[%c768, %c0_78] : memref<784x32xbf16, #tpu.memory_space<vmem>>, vector<1x4xbf16>
    %231 = arith.extf %230 : vector<1x4xbf16> to vector<1x4xf32>
    %232 = vector.broadcast %231 : vector<1x4xf32> to vector<16x4xf32>
    %233 = arith.addf %229, %232 : vector<16x4xf32>
    %c0_79 = arith.constant 0 : index
    %c0_80 = arith.constant 0 : index
    %234 = vector.load %arg5[%c0_79, %c0_80] : memref<16x4xf32, #tpu.memory_space<vmem>>, vector<16x4xf32>
    tpu.vector_store %arg5[%c0_79, %c0_80], %233 {strides = array<i32>} : memref<16x4xf32, #tpu.memory_space<vmem>>, vector<16x4xf32>,
    return
  }
}

</mosaic_0001>

<bundles_post_ra>
// kernel: tpu_custom_call.1
= control target key start
LH: loop header
LB: loop body
LE: loop exit
PB: predicated region body
PF: predicated region fallthrough
CT: control target
= control target key end

     0   :  { %v2298_v1 = vmov 0   ;;  %vm66_vm0 = vcmask 261120   ;;  %vm210_vm1 = vcmask 654336   ;;  %vm539_vm2 = vcmask 130048   ;;  %s2301_s29 = smov 16   ;;  %s2302_s11 = smov 32   ;;  %s3013_s1 = inlined_call_operand.vmem [shape: bf16[48,256], index: 1, kind: input, shape index: {}]   ;;  %s3014_s0 = inlined_call_operand.vmem [shape: f32[128,80], index: 0, kind: input, shape index: {}]   ;;  %s3015_s3 = inlined_call_operand.vmem [shape: bf16[96,80], index: 3, kind: input, shape index: {}]   ;;  %s3016_s4 = inlined_call_operand.vmem [shape: bf16[784,32], index: 4, kind: input, shape index: {}]   ;;  %s3017_s2 = inlined_call_operand.vmem [shape: bf16[368,96], index: 2, kind: input, shape index: {}]   ;;  %s3018_s5 = inlined_call_operand.vmem [shape: f32[16,4], index: 5, kind: output, shape index: {}]  }
   0x1   :  { %v2213_v0 = vld [vmem:[%s3013_s1 + $0x14] ss:$8 sps:$4 sm:$0xff]   ;;  %114 = vmatprep.mubr.bf16.mxu0 %v2298_v1  ;;  %246 = vmatprep.mubr.bf16.mxu1 %v2298_v1  ;;  %v2215_v2 = vld [vmem:[%s3013_s1 + $0x10] ss:$8 sps:$4 sm:$0xff]   ;;  %v2216_v3 = vld [vmem:[%s3013_s1 + $0x4] ss:$8 sps:$4 sm:$0xff]  }
   0x2   :  { %94 = vmatprep.subr.bf16.mxu0 %v2213_v0  ;;  %v2218_v4 = vld [vmem:[%s3013_s1] ss:$8 sps:$4 sm:$0xff]   ;;  %v23_v8 = vld [vmem:[%s3014_s0 + $0x10] sm:$0xff]  ;;  %v24_v9 = vld [vmem:[%s3014_s0 + $0x18] sm:$0xff]  ;;  %vm2300_vm3 = vmmov 0   ;;  %s2303_s16 = smov 48  }
   0x3   :  { %95 = vmatpush1.bf16.msra.mxu0 %v2215_v2  ;;  %v21_v5 = vld [vmem:[%s3014_s0] sm:$0xff]  ;;  %v22_v6 = vld [vmem:[%s3014_s0 + $0x8] sm:$0xff]  ;;  %v42_v10 = vpack.c.bf16 %v24_v9, %v23_v8  ;;  %v27_v14 = vld [vmem:[%s3014_s0 + $0x30] sm:$0xff]  ;;  %s2304_s17 = smov 64  }
   0x4   :  { %96 = vmatprep.subr.bf16.mxu0 %v2216_v3  ;;  %v41_v7 = vpack.c.bf16 %v22_v6, %v21_v5  ;;  %v25_v11 = vld [vmem:[%s3014_s0 + $0x20] sm:$0xff]  ;;  %v26_v12 = vld [vmem:[%s3014_s0 + $0x28] sm:$0xff]  ;;  %v28_v15 = vld [vmem:[%s3014_s0 + $0x38] sm:$0xff] }
   0x5   :  { %v43_v13 = vpack.c.bf16 %v26_v12, %v25_v11  ;;  %v44_v16 = vpack.c.bf16 %v28_v15, %v27_v14  ;;  %v29_v17 = vld [vmem:[%s3014_s0 + $0x40] sm:$0xff]  ;;  %v30_v18 = vld [vmem:[%s3014_s0 + $0x48] sm:$0xff]  ;;  %v2391_v20 = vld [vmem:[%s3016_s4 + $0x78] sm:$0xff]  }
   0x6   :  { %v45_v19 = vpack.c.bf16 %v30_v18, %v29_v17  ;;  %v2396_v21 = vld [vmem:[%s3016_s4 + $0x38] sm:$0xff]   ;;  %v2402_v22 = vld [vmem:[%s3016_s4 + $0x70] sm:$0xff]   ;;  %v2414_v24 = vld [vmem:[%s3016_s4 + $0x68] sm:$0xff]  }
   0x7   :  { %97 = vmatpush1.bf16.msra.mxu0 %v2218_v4  ;;  %v2408_v23 = vld [vmem:[%s3016_s4 + $0x30] sm:$0xff]   ;;  %v2420_v25 = vld [vmem:[%s3016_s4 + $0x28] sm:$0xff]   ;;  %v2426_v26 = vld [vmem:[%s3016_s4 + $0x60] sm:$0xff]  }
   0x8   :  { %1954 = vmatprep.subr.bf16.mxu0 %v2391_v20  ;;  %v2432_v27 = vld [vmem:[%s3016_s4 + $0x20] sm:$0xff]   ;;  %v2438_v28 = vld [vmem:[%s3016_s4 + $0x58] sm:$0xff]   ;;  %v2448_v30 = vld [vmem:[%s3016_s4 + $0x50] sm:$0xff]  }
   0x9   :  { %v2443_v29 = vld [vmem:[%s3016_s4 + $0x18] sm:$0xff]   ;;  %v2455_v31 = vld [vmem:[%s3016_s4 + $0x10] sm:$0xff]   ;;  %v2460_v32 = vld [vmem:[%s3016_s4 + $0x48] sm:$0xff]  }
   0xa   :  { %1869 = vmatmul.mubr.msk.bf16.vlgmr.msra.gmra.mxu0 %vm66_vm0, %v41_v7  ;;  %v2467_v33 = vld [vmem:[%s3016_s4 + $0x8] sm:$0xff]   ;;  %v165_v7 = vld [vmem:[%s3015_s3] sm:$0x7] }
   0xb   :  { %124 = vmatprep.mubr.bf16.mxu0 %v2298_v1  ;;  %1955 = vmatpush3.bf16.msra.mxu0 %v2396_v21 }
   0xc   :  { %1956 = vmatprep.subr.bf16.mxu0 %v2402_v22 }
   0xf   :  { %1957 = vmatpush3.bf16.msra.mxu0 %v2408_v23 }
  0x10   :  { %1958 = vmatprep.subr.bf16.mxu0 %v2414_v24 }
  0x12   :  { %1870 = vmatmul.mubr.msk.bf16.gmra.mxu0 %vm66_vm0, %v42_v10 }
  0x13   :  { %134 = vmatprep.mubr.bf16.mxu0 %v2298_v1  ;;  %1959 = vmatpush3.bf16.msra.mxu0 %v2420_v25 }
  0x14   :  { %1960 = vmatprep.subr.bf16.mxu0 %v2426_v26 }
  0x17   :  { %1961 = vmatpush3.bf16.msra.mxu0 %v2432_v27 }
  0x18   :  { %1962 = vmatprep.subr.bf16.mxu0 %v2438_v28 }
  0x1a   :  { %1871 = vmatmul.mubr.msk.bf16.gmra.mxu0 %vm66_vm0, %v43_v13 }
  0x1b   :  { %144 = vmatprep.mubr.bf16.mxu0 %v2298_v1  ;;  %1963 = vmatpush3.bf16.msra.mxu0 %v2443_v29 }
  0x1c   :  { %1964 = vmatprep.subr.bf16.mxu0 %v2448_v30 }
  0x1f   :  { %1965 = vmatpush3.bf16.msra.mxu0 %v2455_v31 }
  0x20   :  { %1966 = vmatprep.subr.bf16.mxu0 %v2460_v32 }
  0x22   :  { %1872 = vmatmul.mubr.msk.bf16.gmra.mxu0 %vm66_vm0, %v44_v16 }
  0x23   :  { %154 = vmatprep.mubr.bf16.mxu0 %v2298_v1  ;;  %1967 = vmatpush3.bf16.msra.mxu0 %v2467_v33 }
  0x2a   :  { %1873 = vmatmul.mubr.msk.bf16.gmra.mxu0 %vm66_vm0, %v45_v19 }
  0xca   :  { %v2472_v34 = vpop.f32.mrf.mxu0 }
  0xcc   :  { %v2474_v35 = vpop.f32.mrf.mxu0 }
  0xce   :  { %v2476_v36 = vpop.f32.mrf.mxu0 }
  0xcf   :  { %v200_v2 = vpack.c.bf16 %v2476_v36, %v2472_v34 }
  0xd0   :  { %v2478_v37 = vpop.f32.mrf.mxu0 }
  0xd1   :  { %v201_v62 = vpack.c.bf16 %v2478_v37, %v2474_v35 }
  0xd2   :  { %v2480_v38 = vpop.f32.mrf.mxu0 }
  0xd4   :  { %v2482_v39 = vpop.f32.mrf.mxu0 }
  0xd6   :  { %v2484_v40 = vpop.f32.mrf.mxu0 }
  0xd7   :  { %v202_v61 = vpack.c.bf16 %v2484_v40, %v2480_v38 }
  0xd8   :  { %v2486_v41 = vpop.f32.mrf.mxu0 }
  0xd9   :  { %v203_v60 = vpack.c.bf16 %v2486_v41, %v2482_v39  ;;  %v262_v17 = vmul.f32 %v2486_v41, %v2486_v41 }
  0xda   :  { %v2488_v42 = vpop.f32.mrf.mxu0 }
  0xdb   :  { %v263_v19 = vmul.f32 %v2488_v42, %v2488_v42 }
  0xdc   :  { %v2490_v43 = vpop.f32.mrf.mxu0 }
  0xdd   :  { %v264_v14 = vmul.f32 %v2490_v43, %v2490_v43 }
  0xde   :  { %v2492_v44 = vpop.f32.mrf.mxu0 }
  0xdf   :  { %v204_v59 = vpack.c.bf16 %v2492_v44, %v2488_v42  ;;  %v265_v15 = vmul.f32 %v2492_v44, %v2492_v44 }
  0xe0   :  { %v2494_v45 = vpop.f32.mrf.mxu0 }
  0xe1   :  { %v205_v58 = vpack.c.bf16 %v2494_v45, %v2490_v43  ;;  %v266_v11 = vmul.f32 %v2494_v45, %v2494_v45 }
  0xe2   :  { %v2496_v46 = vpop.f32.mrf.mxu0 }
  0xe3   :  { %v267_v13 = vmul.f32 %v2496_v46, %v2496_v46  ;;  %v280_v18 = vpack.c.bf16 %v266_v11, %v264_v14 }
  0xe4   :  { %v2498_v47 = vpop.f32.mrf.mxu0 }
  0xe5   :  { %v268_v8 = vmul.f32 %v2498_v47, %v2498_v47 }
  0xe6   :  { %v2500_v48 = vpop.f32.mrf.mxu0 }
  0xe7   :  { %v206_v57 = vpack.c.bf16 %v2500_v48, %v2496_v46  ;;  %v269_v9 = vmul.f32 %v2500_v48, %v2500_v48 }
  0xe8   :  { %v2502_v49 = vpop.f32.mrf.mxu0 }
  0xe9   :  { %v207_v56 = vpack.c.bf16 %v2502_v49, %v2498_v47  ;;  %v270_v4 = vmul.f32 %v2502_v49, %v2502_v49  ;;  %v281_v16 = vpack.c.bf16 %v269_v9, %v267_v13 }
  0xea   :  { %v2504_v50 = vpop.f32.mrf.mxu0 }
  0xeb   :  { %v271_v6 = vmul.f32 %v2504_v50, %v2504_v50  ;;  %v282_v12 = vpack.c.bf16 %v270_v4, %v268_v8  ;;  %v2237_v4 = vld [vmem:[%s3013_s1 + $0x24] ss:$8 sps:$4 sm:$0xff]  }
  0xec   :  { %v2506_v51 = vpop.f32.mrf.mxu0 }
  0xed   :  { %v272_v0 = vmul.f32 %v2506_v51, %v2506_v51 }
  0xee   :  { %v2508_v52 = vpop.f32.mrf.mxu0 }
  0xef   :  { %v208_v55 = vpack.c.bf16 %v2508_v52, %v2504_v50  ;;  %v273_v3 = vmul.f32 %v2508_v52, %v2508_v52 }
  0xf0   :  { %v2510_v53 = vpop.f32.mrf.mxu0 }
  0xf1   :  { %v209_v54 = vpack.c.bf16 %v2510_v53, %v2506_v51  ;;  %v274_v63 = vmul.f32 %v2510_v53, %v2510_v53  ;;  %v283_v10 = vpack.c.bf16 %v273_v3, %v271_v6  ;;  %v2235_v3 = vld [vmem:[%s3013_s1 + $0x20] ss:$8 sps:$4 sm:$0xff]  }
  0xf3   :  { %220 = vmatprep.subr.bf16.mxu1 %v209_v54  ;;  %v284_v5 = vpack.c.bf16 %v274_v63, %v272_v0  ;;  %v260_v54 = vmul.f32 %v2482_v39, %v2482_v39  ;;  %v255_v0 = vmul.f32 %v2472_v34, %v2472_v34 }
  0xf4   :  { %221 = vmatpush1.bf16.msra.mxu1 %v208_v55  ;;  %v261_v55 = vmul.f32 %v2484_v40, %v2484_v40 }
  0xf5   :  { %222 = vmatprep.subr.bf16.mxu1 %v207_v56  ;;  %v279_v56 = vpack.c.bf16 %v265_v15, %v263_v19 }
  0xf8   :  { %223 = vmatpush1.bf16.msra.mxu1 %v206_v57  ;;  %v258_v57 = vmul.f32 %v2478_v37, %v2478_v37 }
  0xf9   :  { %224 = vmatprep.subr.bf16.mxu1 %v205_v58  ;;  %v278_v58 = vpack.c.bf16 %v262_v17, %v260_v54 }
  0xfc   :  { %225 = vmatpush1.bf16.msra.mxu1 %v204_v59  ;;  %v259_v59 = vmul.f32 %v2480_v38, %v2480_v38 }
  0xfd   :  { %226 = vmatprep.subr.bf16.mxu1 %v203_v60  ;;  %v256_v60 = vmul.f32 %v2474_v35, %v2474_v35 }
  0xff   :  { %v276_v63 = vpack.c.bf16 %v258_v57, %v256_v60  ;;  %v513_v57 = vld [vmem:[%s3016_s4 + $0x150] sm:$0x1]  ;;  %v520_v60 = vld [vmem:[%s3016_s4 + $0x158] sm:$0x1] }
 0x100   :  { %227 = vmatpush1.bf16.msra.mxu1 %v202_v61  ;;  %v257_v61 = vmul.f32 %v2476_v36, %v2476_v36 }
 0x101   :  { %228 = vmatprep.subr.bf16.mxu1 %v201_v62  ;;  %v277_v62 = vpack.c.bf16 %v261_v55, %v259_v59  ;;  %v515_v55 = vlaneseq }
 0x104   :  { %229 = vmatpush1.bf16.msra.mxu1 %v200_v2  ;;  %v275_v2 = vpack.c.bf16 %v257_v61, %v255_v0 }
 0x105   :  { %291 = vmatprep.subr.bf16.mxu1 %v284_v5 }
 0x107   :  { %1874 = vmatmul.mubr.msk.bf16.vlgmr.msra.gmra.mxu1 %vm210_vm1, %v165_v7 }
 0x108   :  { %292 = vmatpush1.bf16.msra.mxu1 %v283_v10  ;;  %317 = vmatprep.mubr.bf16.mxu1 %v2298_v1 }
 0x109   :  { %293 = vmatprep.subr.bf16.mxu1 %v282_v12 }
 0x10c   :  { %294 = vmatpush1.bf16.msra.mxu1 %v281_v16 }
 0x10d   :  { %295 = vmatprep.subr.bf16.mxu1 %v280_v18 }
 0x110   :  { %296 = vmatpush1.bf16.msra.mxu1 %v279_v56  ;;  %v2605_v56 = vshrl.u32 %v515_v55, 7 }
 0x111   :  { %297 = vmatprep.subr.bf16.mxu1 %v278_v58  ;;  %v514_v58 = vunpack.c.l.bf16 %v513_v57 }
 0x112   :  { %v2611_v59 = vsub.s32 0, %v2605_v56  ;;  %v703_v55 = vsub.s32 2, %v2605_v56 }
 0x114   :  { %298 = vmatpush1.bf16.msra.mxu1 %v277_v62  ;;  %v518_v61 = vrot.slane %v514_v58, %v2611_v59  ;;  %v521_v62 = vunpack.c.l.bf16 %v520_v60 }
 0x115   :  { %299 = vmatprep.subr.bf16.mxu1 %v276_v63 }
 0x118   :  { %300 = vmatpush1.bf16.msra.mxu1 %v275_v2 }
 0x119   :  { %1976 = vmatprep.subr.bf16.mxu1 %v2391_v20  ;;  %v2233_v20 = vld [vmem:[%s3016_s4 + $0x40] sm:$0xff]  }
 0x11a   :  { %1968 = vmatprep.subr.bf16.mxu0 %v2233_v20 }
 0x11b   :  { %1875 = vmatmul.mubr.msk.bf16.vlgmr.msra.gmra.mxu1 %vm210_vm1, %v165_v7 }
 0x11c   :  { %1977 = vmatpush3.bf16.msra.mxu1 %v2396_v21  ;;  %v2234_v21 = vld [vmem:[%s3016_s4] sm:$0xff]  }
 0x11d   :  { %1978 = vmatprep.subr.bf16.mxu1 %v2402_v22  ;;  %1969 = vmatpush3.bf16.msra.mxu0 %v2234_v21 }
 0x11e   :  { %557 = vmatprep.subr.bf16.mxu0 %v2237_v4 }
 0x120   :  { %1979 = vmatpush3.bf16.msra.mxu1 %v2408_v23 }
 0x121   :  { %1980 = vmatprep.subr.bf16.mxu1 %v2414_v24 }
 0x124   :  { %1981 = vmatpush3.bf16.msra.mxu1 %v2420_v25 }
 0x125   :  { %1982 = vmatprep.subr.bf16.mxu1 %v2426_v26 }
 0x128   :  { %1983 = vmatpush3.bf16.msra.mxu1 %v2432_v27 }
 0x129   :  { %1984 = vmatprep.subr.bf16.mxu1 %v2438_v28 }
 0x12c   :  { %1985 = vmatpush3.bf16.msra.mxu1 %v2443_v29 }
 0x12d   :  { %1986 = vmatprep.subr.bf16.mxu1 %v2448_v30 }
 0x130   :  { %1987 = vmatpush3.bf16.msra.mxu1 %v2455_v31 }
 0x131   :  { %1988 = vmatprep.subr.bf16.mxu1 %v2460_v32 }
 0x134   :  { %1989 = vmatpush3.bf16.msra.mxu1 %v2467_v33 }
 0x135   :  { %1990 = vmatprep.subr.bf16.mxu1 %v2233_v20 }
 0x138   :  { %1991 = vmatpush3.bf16.msra.mxu1 %v2234_v21  ;;  %v526_v21 = vrot.slane %v521_v62, %v2611_v59 }
 0x1c7   :  { %v248_v22 = vpop.f32.mrf.mxu1 }
 0x1c8   :  { %v326_v25 = vpack.c.bf16 %v248_v22, %v248_v22  ;;  %v2238_v22 = vld [vmem:[%s3016_s4 + $0xf8] sm:$0xff]  }
 0x1c9   :  { %v250_v23 = vpop.f32.mrf.mxu1 }
 0x1ca   :  { %v327_v24 = vpack.c.bf16 %v250_v23, %v250_v23 }
 0x1cb   :  { %v252_v26 = vpop.f32.mrf.mxu1 }
 0x1cc   :  { %456 = vmatprep.mubr.bf16.mxu0 %v327_v24  ;;  %v2239_v24 = vld [vmem:[%s3016_s4 + $0xb8] sm:$0xff]   ;;  %v2240_v26 = vld [vmem:[%s3016_s4 + $0xf0] sm:$0xff]  }
 0x1cd   :  { %v253_v27 = vpop.f32.mrf.mxu1  ;;  %457 = vmatmul.mubr.bf16.vlgmr.msra.gmra.mxu0 %v326_v25 }
 0x1ce   :  { %575 = vmatprep.mubr.bf16.mxu0 %v2298_v1  ;;  %558 = vmatpush1.bf16.msra.mxu0 %v2235_v3  ;;  %v2241_v27 = vld [vmem:[%s3016_s4 + $0xb0] sm:$0xff]  }
 0x1cf   :  { %602 = vmatprep.subr.bf16.mxu0 %v2237_v4  ;;  %v2250_v4 = vld [vmem:[%s3016_s4 + $0xc8] sm:$0xff]  }
 0x1db   :  { %v319_v28 = vpop.f32.mrf.mxu1 }
 0x1dc   :  { %v465_v31 = vpack.c.bf16 %v319_v28, %v319_v28  ;;  %v2243_v28 = vld [vmem:[%s3016_s4 + $0xa8] sm:$0xff]  }
 0x1dd   :  { %v321_v29 = vpop.f32.mrf.mxu1 }
 0x1de   :  { %v466_v30 = vpack.c.bf16 %v321_v29, %v321_v29  ;;  %v2244_v29 = vld [vmem:[%s3016_s4 + $0xe0] sm:$0xff]  }
 0x1df   :  { %v323_v32 = vpop.f32.mrf.mxu1 }
 0x1e0   :  { %499 = vmatprep.mubr.bf16.mxu1 %v466_v30  ;;  %v2245_v30 = vld [vmem:[%s3016_s4 + $0xa0] sm:$0xff]   ;;  %v2247_v32 = vld [vmem:[%s3016_s4 + $0x98] sm:$0xff]  }
 0x1e1   :  { %v324_v33 = vpop.f32.mrf.mxu1  ;;  %500 = vmatmul.mubr.bf16.vlgmr.msra.gmra.mxu1 %v465_v31  ;;  %v2246_v31 = vld [vmem:[%s3016_s4 + $0xd8] sm:$0xff]  }
 0x1e2   :  { %v2248_v33 = vld [vmem:[%s3016_s4 + $0xd0] sm:$0xff]  }
 0x28d   :  { %v1970_v5 = vpop.f32.mrf.mxu0 }
 0x28f   :  { %v1971_v6 = vpop.f32.mrf.mxu0 }
 0x290   :  { %v1972_v9 = vadd.f32 %v1971_v6, %v1970_v5  ;;  %v2251_v5 = vld [vmem:[%s3016_s4 + $0x88] sm:$0xff]   ;;  %v2252_v6 = vld [vmem:[%s3016_s4 + $0xc0] sm:$0xff]  }
 0x291   :  { %v1973_v7 = vpop.f32.mrf.mxu0 }
 0x292   :  { %v464_v11 = vmul.f32 0.00390625, %v1972_v9  ;;  %v2253_v7 = vld [vmem:[%s3016_s4 + $0x80] sm:$0xff]   ;;  %v2299_v9 = vmov 0.0  }
 0x293   :  { %v1974_v8 = vpop.f32.mrf.mxu0  ;;  %2086 = vmatprep.subr.bf16.mxu1 %v2299_v9  ;;  %2096 = vmatprep.mubr.msk.bf16.mxu1 %vm2300_vm3, %v2299_v9 }
 0x294   :  { %v508_v15 = vmul.f32 %v464_v11, %v464_v11  ;;  %v2254_v8 = vld [vmem:[%s3015_s3 + $0x28] sm:$0xff]  }
 0x295   :  { %2087 = vmatpush3.bf16.msra.mxu1 %v2254_v8 }
 0x296   :  { %2088 = vmatprep.subr.bf16.mxu1 %v2299_v9 }
 0x2a1   :  { %v1992_v10 = vpop.f32.mrf.mxu1 }
 0x2a3   :  { %v1993_v12 = vpop.f32.mrf.mxu1 }
 0x2a4   :  { %v1994_v13 = vadd.f32 %v1993_v12, %v1992_v10  ;;  %v2255_v10 = vld [vmem:[%s3015_s3 + $0x20] sm:$0xff]   ;;  %v2257_v12 = vld [vmem:[%s3015_s3 + $0x10] sm:$0xff]  }
 0x2a5   :  { %v1995_v14 = vpop.f32.mrf.mxu1  ;;  %2089 = vmatpush3.bf16.msra.mxu1 %v2255_v10 }
 0x2a6   :  { %v507_v16 = vmul.f32 0.00390625, %v1994_v13  ;;  %2090 = vmatprep.subr.bf16.mxu1 %v2299_v9  ;;  %v2690_v13 = vld [vmem:[%s3014_s0 + $0x50] sm:$0xff]  ;;  %v2695_v14 = vld [vmem:[%s3014_s0 + $0x58] sm:$0xff] }
 0x2a7   :  { %v1996_v17 = vpop.f32.mrf.mxu1 }
 0x2a8   :  { %v509_v18 = vsub.f32 %v507_v16, %v508_v15  ;;  %v1078_v15 = vmul.f32 %v2690_v13, %v2690_v13  ;;  %v1079_v16 = vmul.f32 %v2695_v14, %v2695_v14  ;;  %v2258_v17 = vld [vmem:[%s3015_s3 + $0x8] sm:$0xff]  }
 0x2aa   :  { %v510_v19 = vmax.f32 %v509_v18, 0.0  ;;  %v1090_v18 = vpack.c.bf16 %v1079_v16, %v1078_v15 }
 0x2ac   :  { %v511_v54 = vadd.f32 1e-05, %v510_v19 }
 0x2ae   :  { %2288 = vrsqrt.f32 %v511_v54  ;;  %v667_v54 = vsub.s32 1, %v2605_v56 }
 0x2bb   :  { %v2289_v63 = vpop.eup %2288 }
 0x2bc   :  { %v519_v0 = vmul.f32 %v2289_v63, %v518_v61 }
 0x2be   :  { %v528_v2 = vpack.c.bf16 %v519_v0, %v519_v0  ;;  %v522_v20 = vmul.f32 %v519_v0, %v464_v11  ;;  %v2256_v11 = vld [vmem:[%s3015_s3 + $0x18] sm:$0xff]  }
 0x2bf   :  { %2091 = vmatpush3.bf16.msra.mxu1 %v2256_v11 }
 0x2c0   :  { %1894 = vmatmul.mubr.msk.bf16.vlgmr.msra.gmra.mxu0 %vm539_vm2, %v528_v2  ;;  %v527_v23 = vsub.f32 %v526_v21, %v522_v20  ;;  %2092 = vmatprep.subr.bf16.mxu1 %v2299_v9  ;;  %v2724_v20 = vsub.s32 3, %v2605_v56 }
 0x2c1   :  { %603 = vmatpush1.bf16.msra.mxu0 %v2235_v3  ;;  %620 = vmatprep.mubr.bf16.mxu0 %v2298_v1  ;;  %v2242_v1 = vld [vmem:[%s3016_s4 + $0xe8] sm:$0xff]   ;;  %v2249_v3 = vld [vmem:[%s3016_s4 + $0x90] sm:$0xff]  }
 0x2c2   :  { %1998 = vmatprep.subr.bf16.mxu0 %v2238_v22  ;;  %v584_v25 = vpack.c.bf16 %v527_v23, %v527_v23 }
 0x2c3   :  { %2093 = vmatpush3.bf16.msra.mxu1 %v2257_v12 }
 0x2c4   :  { %2094 = vmatprep.subr.bf16.mxu1 %v2299_v9 }
 0x2c7   :  { %2095 = vmatpush3.bf16.msra.mxu1 %v2258_v17 }
 0x2c8   :  { %1895 = vmatmul.mubr.msk.bf16.vlgmr.msra.gmra.mxu0 %vm539_vm2, %v584_v25  ;;  %2100 = vmatprep.subr.bf16.mxu1 %v2299_v9 }
 0x2c9   :  { %1999 = vmatpush3.bf16.msra.mxu0 %v2239_v24 }
 0x2ca   :  { %2000 = vmatprep.subr.bf16.mxu0 %v2240_v26  ;;  %2097 = vmatmul.mubr.msk.bf16.vlgmr.msra.gmra.mxu1 %vm210_vm1, %v1090_v18 }
 0x2cb   :  { %2110 = vmatprep.mubr.msk.bf16.mxu1 %vm2300_vm3, %v2299_v9 }
 0x2cd   :  { %2001 = vmatpush3.bf16.msra.mxu0 %v2241_v27 }
 0x2ce   :  { %2002 = vmatprep.subr.bf16.mxu0 %v2242_v1 }
 0x2d1   :  { %2003 = vmatpush3.bf16.msra.mxu0 %v2243_v28 }
 0x2d2   :  { %2004 = vmatprep.subr.bf16.mxu0 %v2244_v29 }
 0x2d5   :  { %2005 = vmatpush3.bf16.msra.mxu0 %v2245_v30 }
 0x2d6   :  { %2006 = vmatprep.subr.bf16.mxu0 %v2246_v31 }
 0x2d9   :  { %2007 = vmatpush3.bf16.msra.mxu0 %v2247_v32 }
 0x2da   :  { %2008 = vmatprep.subr.bf16.mxu0 %v2248_v33 }
 0x2dd   :  { %2009 = vmatpush3.bf16.msra.mxu0 %v2249_v3 }
 0x2de   :  { %2010 = vmatprep.subr.bf16.mxu0 %v2250_v4 }
 0x2e1   :  { %2011 = vmatpush3.bf16.msra.mxu0 %v2251_v5 }
 0x2e2   :  { %2012 = vmatprep.subr.bf16.mxu0 %v2252_v6 }
 0x2e5   :  { %2013 = vmatpush3.bf16.msra.mxu0 %v2253_v7 }
 0x2e6   :  { %2128 = vmatprep.subr.bf16.mxu0 %v2299_v9 }
 0x380   :  { %v2710_v19 = vpop.f32.mrf.mxu0 }
 0x381   :  { %v632_v58 = vrot.slane %v2710_v19, %v2611_v59  ;;  %v668_v60 = vrot.slane %v2710_v19, %v667_v54  ;;  %v704_v62 = vrot.slane %v2710_v19, %v703_v55 }
 0x382   :  { %v2714_v57 = vpop.f32.mrf.mxu0 }
 0x383   :  { %v636_v63 = vrot.slane %v2714_v57, %v2611_v59  ;;  %v672_v0 = vrot.slane %v2714_v57, %v667_v54  ;;  %v637_v21 = vmul.f32 %v632_v58, %v2472_v34  ;;  %v639_v22 = vmul.f32 %v632_v58, %v2476_v36 }
 0x384   :  { %v581_v61 = vpop.f32.mrf.mxu0  ;;  %v673_v23 = vmul.f32 %v668_v60, %v2480_v38  ;;  %v708_v24 = vrot.slane %v2714_v57, %v703_v55  ;;  %v675_v26 = vmul.f32 %v668_v60, %v2484_v40  ;;  %v2734_v27 = vmul.f32 %v704_v62, %v2488_v42 }
 0x385   :  { %v2737_v1 = vmul.f32 %v704_v62, %v2492_v44  ;;  %v638_v34 = vmul.f32 %v636_v63, %v2474_v35  ;;  %v640_v36 = vmul.f32 %v636_v63, %v2478_v37  ;;  %v674_v38 = vmul.f32 %v672_v0, %v2482_v39 }
 0x386   :  { %v582_v2 = vpop.f32.mrf.mxu0  ;;  %v676_v29 = vmul.f32 %v672_v0, %v2486_v41  ;;  %v710_v32 = vmul.f32 %v708_v24, %v2490_v43  ;;  %v712_v33 = vmul.f32 %v708_v24, %v2494_v45  ;;  %v744_v18 = vrot.slane %v2714_v57, %v2724_v20 }
 0x388   :  { %v2730_v25 = vpop.f32.mrf.mxu0 }
 0x389   :  { %v644_v28 = vrot.slane %v2730_v25, %v2611_v59  ;;  %v680_v35 = vrot.slane %v2730_v25, %v667_v54  ;;  %v716_v2 = vrot.slane %v2730_v25, %v703_v55 }
 0x38a   :  { %v2745_v30 = vpop.f32.mrf.mxu0 }
 0x38b   :  { %v649_v40 = vadd.f32 %v644_v28, %v637_v21  ;;  %v651_v31 = vadd.f32 %v644_v28, %v639_v22  ;;  %v648_v42 = vrot.slane %v2745_v30, %v2611_v59  ;;  %v684_v44 = vrot.slane %v2745_v30, %v667_v54 }
 0x38c   :  { %v720_v37 = vrot.slane %v2745_v30, %v703_v55  ;;  %v626_v39 = vpop.f32.mrf.mxu0  ;;  %v685_v12 = vadd.f32 %v680_v35, %v673_v23  ;;  %v687_v60 = vadd.f32 %v680_v35, %v675_v26  ;;  %v756_v24 = vrot.slane %v2745_v30, %v2724_v20 }
 0x38d   :  { %v650_v3 = vadd.f32 %v648_v42, %v638_v34  ;;  %v652_v41 = vadd.f32 %v648_v42, %v640_v36  ;;  %vm653_vm4 = vcmp.gt.f32.partialorder %v649_v40, 0.0  ;;  %vm655_vm5 = vcmp.gt.f32.partialorder %v651_v31, 0.0 }
 0x38e   :  { %v627_v4 = vpop.f32.mrf.mxu0  ;;  %v657_v5 = vmul.f32 0.01, %v649_v40  ;;  %v659_v6 = vmul.f32 0.01, %v651_v31  ;;  %v686_v7 = vadd.f32 %v684_v44, %v674_v38  ;;  %v688_v8 = vadd.f32 %v684_v44, %v676_v29 }
 0x38f   :  { %vm654_vm6 = vcmp.gt.f32.partialorder %v650_v3, 0.0  ;;  %vm656_vm7 = vcmp.gt.f32.partialorder %v652_v41, 0.0  ;;  %v658_v10 = vmul.f32 0.01, %v650_v3  ;;  %v660_v43 = vmul.f32 0.01, %v652_v41 }
 0x390   :  { %v661_v11 = vsel %vm653_vm4, %v649_v40, %v657_v5  ;;  %v663_v45 = vsel %vm655_vm5, %v651_v31, %v659_v6  ;;  %vm690_vm8 = vcmp.gt.f32.partialorder %v686_v7, 0.0  ;;  %vm692_vm9 = vcmp.gt.f32.partialorder %v688_v8, 0.0 }
 0x391   :  { %v662_v15 = vsel %vm654_vm6, %v650_v3, %v658_v10  ;;  %v664_v16 = vsel %vm656_vm7, %v652_v41, %v660_v43  ;;  %v694_v17 = vmul.f32 0.01, %v686_v7  ;;  %v696_v58 = vmul.f32 0.01, %v688_v8 }
 0x392   :  { %v842_v54 = vpack.c.bf16 %v664_v16, %v662_v15  ;;  %v841_v61 = vpack.c.bf16 %v663_v45, %v661_v11  ;;  %v722_v63 = vadd.f32 %v720_v37, %v710_v32  ;;  %v724_v0 = vadd.f32 %v720_v37, %v712_v33 }
 0x393   :  { %v698_v62 = vsel %vm690_vm8, %v686_v7, %v694_v17  ;;  %v700_v21 = vsel %vm692_vm9, %v688_v8, %v696_v58  ;;  %v693_v22 = vmul.f32 0.01, %v685_v12  ;;  %v695_v23 = vmul.f32 0.01, %v687_v60 }
 0x394   :  { %985 = vmatprep.mubr.bf16.mxu0 %v842_v54  ;;  %v844_v28 = vpack.c.bf16 %v700_v21, %v698_v62  ;;  %vm689_vm10 = vcmp.gt.f32.partialorder %v685_v12, 0.0  ;;  %vm691_vm11 = vcmp.gt.f32.partialorder %v687_v60, 0.0  ;;  %vm726_vm12 = vcmp.gt.f32.partialorder %v722_v63, 0.0 }
 0x395   :  { %986 = vmatmul.mubr.bf16.vlgmr.msra.gmra.mxu0 %v841_v61  ;;  %vm728_vm13 = vcmp.gt.f32.partialorder %v724_v0, 0.0  ;;  %v730_v26 = vmul.f32 0.01, %v722_v63  ;;  %v732_v34 = vmul.f32 0.01, %v724_v0  ;;  %v775_v36 = vsub.s32 4, %v2605_v56 }
 0x396   :  { %v746_v38 = vmul.f32 %v744_v18, %v2498_v47  ;;  %v748_v55 = vmul.f32 %v744_v18, %v2502_v49  ;;  %993 = vmatprep.mubr.bf16.mxu0 %v844_v28  ;;  %v697_v29 = vsel %vm689_vm10, %v685_v12, %v693_v22  ;;  %v699_v40 = vsel %vm691_vm11, %v687_v60, %v695_v23 }
 0x397   :  { %v721_v31 = vadd.f32 %v716_v2, %v2734_v27  ;;  %v723_v42 = vadd.f32 %v716_v2, %v2737_v1  ;;  %v734_v44 = vsel %vm726_vm12, %v722_v63, %v730_v26  ;;  %v736_v32 = vsel %vm728_vm13, %v724_v0, %v732_v34 }
 0x398   :  { %v758_v33 = vadd.f32 %v756_v24, %v746_v38  ;;  %v760_v35 = vadd.f32 %v756_v24, %v748_v55  ;;  %v740_v37 = vrot.slane %v2710_v19, %v2724_v20  ;;  %v780_v56 = vrot.slane %v2714_v57, %v775_v36  ;;  %v2783_v24 = vld [vmem:[%s3014_s0 + $0x70] sm:$0xff] }
 0x399   :  { %v752_v47 = vrot.slane %v2730_v25, %v2724_v20  ;;  %v843_v49 = vpack.c.bf16 %v699_v40, %v697_v29  ;;  %v792_v39 = vrot.slane %v2745_v30, %v775_v36  ;;  %v846_v3 = vpack.c.bf16 %v736_v32, %v734_v44  ;;  %v2261_v44 = vld [vmem:[%s3017_s2 + $0x38] sm:$0xff]   ;;  %v2262_v32 = vld [vmem:[%s3017_s2 + $0x30] sm:$0xff]  }
 0x39a   :  { %v729_v41 = vmul.f32 0.01, %v721_v31  ;;  %v731_v27 = vmul.f32 0.01, %v723_v42  ;;  %vm725_vm14 = vcmp.gt.f32.partialorder %v721_v31, 0.0  ;;  %vm727_vm15 = vcmp.gt.f32.partialorder %v723_v42, 0.0 }
 0x39b   :  { %v766_v1 = vmul.f32 0.01, %v758_v33  ;;  %v768_v4 = vmul.f32 0.01, %v760_v35  ;;  %v745_v5 = vmul.f32 %v740_v37, %v2496_v46  ;;  %v747_v6 = vmul.f32 %v740_v37, %v2500_v48 }
 0x39c   :  { %vm762_vm4 = vcmp.gt.f32.partialorder %v758_v33, 0.0  ;;  %vm764_vm5 = vcmp.gt.f32.partialorder %v760_v35, 0.0  ;;  %v782_v57 = vmul.f32 %v780_v56, %v2506_v51  ;;  %v784_v20 = vmul.f32 %v780_v56, %v2510_v53 }
 0x39d   :  { %994 = vmatmul.mubr.bf16.gmra.mxu0 %v843_v49  ;;  %v733_v30 = vsel %vm725_vm14, %v721_v31, %v729_v41  ;;  %v735_v7 = vsel %vm727_vm15, %v723_v42, %v731_v27  ;;  %v757_v8 = vadd.f32 %v752_v47, %v745_v5  ;;  %v759_v10 = vadd.f32 %v752_v47, %v747_v6  ;;  %v2259_v31 = vld [vmem:[%s3017_s2 + $0x48] sm:$0xff]   ;;  %v2260_v42 = vld [vmem:[%s3017_s2 + $0x40] sm:$0xff]  }
 0x39e   :  { %1001 = vmatprep.mubr.bf16.mxu0 %v846_v3  ;;  %v770_v43 = vsel %vm762_vm4, %v758_v33, %v766_v1  ;;  %v772_v11 = vsel %vm764_vm5, %v760_v35, %v768_v4  ;;  %v794_v45 = vadd.f32 %v792_v39, %v782_v57  ;;  %v796_v12 = vadd.f32 %v792_v39, %v784_v20  ;;  %v851_v33 = vld [vmem:[%s3016_s4 + $0x148] sm:$0x1]  ;;  %v1158_v57 = vpop.f32.mrf.mxu1  ;;  %v2264_v20 = vld [vmem:[%s3017_s2 + $0x70] sm:$0xff]  }
 0x39f   :  { %v776_v15 = vrot.slane %v2710_v19, %v775_v36  ;;  %v845_v46 = vpack.c.bf16 %v735_v7, %v733_v30  ;;  %v788_v48 = vrot.slane %v2730_v25, %v775_v36  ;;  %v848_v16 = vpack.c.bf16 %v772_v11, %v770_v43  ;;  %v2793_v36 = vld [vmem:[%s3014_s0 + $0x78] sm:$0xff]  ;;  %2101 = vmatpush3.bf16.msra.mxu1 %v2259_v31  ;;  %v2263_v6 = vld [vmem:[%s3017_s2 + $0x28] sm:$0xff]  }
 0x3a0   :  { %v765_v17 = vmul.f32 0.01, %v757_v8  ;;  %v767_v18 = vmul.f32 0.01, %v759_v10  ;;  %vm761_vm6 = vcmp.gt.f32.partialorder %v757_v8, 0.0  ;;  %vm763_vm7 = vcmp.gt.f32.partialorder %v759_v10, 0.0  ;;  %2102 = vmatprep.subr.bf16.mxu1 %v2299_v9  ;;  %v2098_v7 = vpop.f32.mrf.mxu1  ;;  %2129 = vmatpush3.bf16.msra.mxu0 %v2264_v20 }
 0x3a1   :  { %v802_v51 = vmul.f32 0.01, %v794_v45  ;;  %v804_v53 = vmul.f32 0.01, %v796_v12  ;;  %v781_v54 = vmul.f32 %v776_v15, %v2504_v50  ;;  %v783_v58 = vmul.f32 %v776_v15, %v2508_v52  ;;  %2130 = vmatprep.subr.bf16.mxu0 %v2299_v9 }
 0x3a2   :  { %vm798_vm8 = vcmp.gt.f32.partialorder %v794_v45, 0.0  ;;  %vm800_vm9 = vcmp.gt.f32.partialorder %v796_v12, 0.0  ;;  %v769_v60 = vsel %vm761_vm6, %v757_v8, %v765_v17  ;;  %v771_v19 = vsel %vm763_vm7, %v759_v10, %v767_v18 }
 0x3a3   :  { %v793_v61 = vadd.f32 %v788_v48, %v781_v54  ;;  %v795_v62 = vadd.f32 %v788_v48, %v783_v58  ;;  %v806_v25 = vsel %vm798_vm8, %v794_v45, %v802_v51  ;;  %v808_v63 = vsel %vm800_vm9, %v796_v12, %v804_v53  ;;  %2103 = vmatpush3.bf16.msra.mxu1 %v2260_v42  ;;  %v2265_v48 = vld [vmem:[%s3017_s2 + $0x20] sm:$0xff]   ;;  %v1161_v51 = vpop.f32.mrf.mxu1  ;;  %v2266_v54 = vld [vmem:[%s3017_s2 + $0x18] sm:$0xff]  }
 0x3a4   :  { %v847_v0 = vpack.c.bf16 %v771_v19, %v769_v60  ;;  %v850_v2 = vpack.c.bf16 %v808_v63, %v806_v25  ;;  %v1070_v28 = vmul.f32 %v2783_v24, %v2783_v24  ;;  %v1068_v34 = vsub.f32 %v2690_v13, %v2783_v24  ;;  %2104 = vmatprep.subr.bf16.mxu1 %v2299_v9 }
 0x3a5   :  { %1002 = vmatmul.mubr.bf16.gmra.mxu0 %v845_v46  ;;  %v801_v21 = vmul.f32 0.01, %v793_v61  ;;  %v803_v22 = vmul.f32 0.01, %v795_v62  ;;  %vm797_vm10 = vcmp.gt.f32.partialorder %v793_v61, 0.0  ;;  %vm799_vm11 = vcmp.gt.f32.partialorder %v795_v62, 0.0  ;;  %v2099_v60 = vpop.f32.mrf.mxu1 }
 0x3a6   :  { %1009 = vmatprep.mubr.bf16.mxu0 %v848_v16  ;;  %v1072_v26 = vsel %vm539_vm2, %v1070_v28, 0.0  ;;  %v1071_v38 = vmul.f32 %v2793_v36, %v2793_v36  ;;  %v1069_v55 = vsub.f32 %v2695_v14, %v2793_v36  ;;  %v852_v35 = vunpack.c.l.bf16 %v851_v33  ;;  %v2267_v16 = vld [vmem:[%s3017_s2 + $0x68] sm:$0xff]  }
 0x3a7   :  { %v805_v50 = vsel %vm797_vm10, %v793_v61, %v801_v21  ;;  %v807_v23 = vsel %vm799_vm11, %v795_v62, %v803_v22  ;;  %1073 = vadd.xlane.f32.xlu0 %v1072_v26  ;;  %2105 = vmatpush3.bf16.msra.mxu1 %v2261_v44  ;;  %v2268_v22 = vld [vmem:[%s3017_s2 + $0x10] sm:$0xff]   ;;  %v2270_v28 = vld [vmem:[%s3017_s2 + $0x8] sm:$0xff]   ;;  %v2271_v26 = vld [vmem:[%s3017_s2 + $0x58] sm:$0xff]   ;;  %v1166_v33 = vmul.f32 %v2793_v36, %v2695_v14  ;;  %vm1062_vm12 = vcmask 392192  }
 0x3a8   :  { %v849_v52 = vpack.c.bf16 %v807_v23, %v805_v50  ;;  %v1075_v29 = vsel %vm539_vm2, %v1071_v38, 0.0  ;;  %v1194_v40 = vpack.c.bf16 %v1069_v55, %v1068_v34  ;;  %2106 = vmatprep.subr.bf16.mxu1 %v2299_v9  ;;  %v2820_v56 = vrot.slane %v852_v35, %v2611_v59  ;;  %2131 = vmatpush3.bf16.msra.mxu0 %v2267_v16  ;;  %v2269_v50 = vld [vmem:[%s3017_s2 + $0x60] sm:$0xff]   ;;  %v2276_v60 = vld [vmem:[%s3017_s2 + $0x88] sm:$0xff]  }
 0x3a9   :  { %2132 = vmatprep.subr.bf16.mxu0 %v2299_v9  ;;  %vm1065_vm13 = vcmask 523264   ;;  %vm1858_vm6 = vcmask 31744  }
 0x3ab   :  { %1076 = vadd.xlane.f32.xlu0 %v1075_v29  ;;  %2107 = vmatpush3.bf16.msra.mxu1 %v2262_v32 }
 0x3ac   :  { %2108 = vmatprep.subr.bf16.mxu1 %v2299_v9  ;;  %2133 = vmatpush3.bf16.msra.mxu0 %v2269_v50 }
 0x3ad   :  { %1010 = vmatmul.mubr.bf16.gmra.mxu0 %v847_v0  ;;  %2134 = vmatprep.subr.bf16.mxu0 %v2299_v9 }
 0x3ae   :  { %1017 = vmatprep.mubr.bf16.mxu0 %v850_v2 }
 0x3af   :  { %2109 = vmatpush3.bf16.msra.mxu1 %v2263_v6 }
 0x3b0   :  { %2114 = vmatprep.subr.bf16.mxu1 %v2299_v9  ;;  %2135 = vmatpush3.bf16.msra.mxu0 %v2271_v26  ;;  %v2279_v26 = vld [vmem:[%s3016_s4 + $0x128] sm:$0xff]  }
 0x3b1   :  { %2136 = vmatprep.subr.bf16.mxu0 %v2299_v9 }
 0x3b2   :  { %2111 = vmatmul.mubr.msk.bf16.vlgmr.msra.gmra.mxu1 %vm210_vm1, %v1194_v40  ;;  %v1165_v40 = vmul.f32 %v2783_v24, %v2690_v13  ;;  %v2273_v13 = vld [vmem:[%s3017_s2 + $0x50] sm:$0xff]  }
 0x3b3   :  { %2124 = vmatprep.mubr.msk.bf16.mxu1 %vm2300_vm3, %v2299_v9  ;;  %2115 = vmatpush3.bf16.msra.mxu1 %v2265_v48 }
 0x3b4   :  { %2116 = vmatprep.subr.bf16.mxu1 %v2299_v9  ;;  %2137 = vmatpush3.bf16.msra.mxu0 %v2273_v13 }
 0x3b5   :  { %1018 = vmatmul.mubr.bf16.gmra.mxu0 %v849_v52  ;;  %2156 = vmatprep.subr.bf16.mxu0 %v2299_v9 }
 0x3b6   :  { %2138 = vmatprep.mubr.msk.bf16.mxu0 %vm2300_vm3, %v2299_v9 }
 0x3b7   :  { %2117 = vmatpush3.bf16.msra.mxu1 %v2266_v54 }
 0x3b8   :  { %2118 = vmatprep.subr.bf16.mxu1 %v2299_v9 }
 0x3bb   :  { %2119 = vmatpush3.bf16.msra.mxu1 %v2268_v22 }
 0x3bc   :  { %2120 = vmatprep.subr.bf16.mxu1 %v2299_v9 }
 0x3bf   :  { %2121 = vmatpush3.bf16.msra.mxu1 %v2270_v28 }
 0x3c0   :  { %2122 = vmatprep.subr.bf16.mxu1 %v2299_v9 }
 0x430   :  { %v1074_v46 = vpop.xlane.xlu0 %1073 }
 0x431   :  { %v1167_v18 = vmul.f32 %v1158_v57, %v1074_v46 }
 0x433   :  { %2290 = vrsqrt.f32 %v1167_v18 }
 0x434   :  { %v1077_v61 = vpop.xlane.xlu0 %1076 }
 0x435   :  { %v1168_v25 = vmul.f32 %v1161_v51, %v1077_v61  ;;  %v2278_v61 = vld [vmem:[%s3017_s2 + $0x78] sm:$0xff]  }
 0x437   :  { %2292 = vrsqrt.f32 %v1168_v25  ;;  %v34_v25 = vld [vmem:[%s3014_s0 + $0x68] sm:$0xff] }
 0x440   :  { %v2291_v44 = vpop.eup %2290 }
 0x455   :  { %v2014_v37 = vpop.f32.mrf.mxu0 }
 0x457   :  { %v2015_v47 = vpop.f32.mrf.mxu0 }
 0x458   :  { %v2016_v49 = vadd.f32 %v2015_v47, %v2014_v37  ;;  %v2272_v37 = vld [vmem:[%s3017_s2] sm:$0xff]  }
 0x459   :  { %v2017_v39 = vpop.f32.mrf.mxu0  ;;  %2123 = vmatpush3.bf16.msra.mxu1 %v2272_v37 }
 0x45a   :  { %v2823_v3 = vadd.f32 %v2016_v49, %v2820_v56  ;;  %v1171_v49 = vmul.f32 %v2291_v44, %v1165_v40  ;;  %2142 = vmatprep.subr.bf16.mxu1 %v2299_v9  ;;  %v2284_v40 = vld [vmem:[%s3016_s4 + $0x100] sm:$0xff]  }
 0x45b   :  { %v2018_v41 = vpop.f32.mrf.mxu0 }
 0x45c   :  { %v2019_v27 = vadd.f32 %v2018_v41, %v2017_v39  ;;  %v2293_v39 = vpop.eup %2292 }
 0x45d   :  { %v2020_v1 = vpop.f32.mrf.mxu0  ;;  %v1172_v36 = vmul.f32 %v2293_v39, %v1166_v33  ;;  %v1517_v33 = vld [vmem:[%s3017_s2 + $0xa0] sm:$0x1] }
 0x45e   :  { %v2826_v4 = vadd.f32 %v2019_v27, %v2820_v56  ;;  %v1518_v37 = vunpack.c.l.bf16 %v1517_v33 }
 0x45f   :  { %v2021_v5 = vpop.f32.mrf.mxu0 }
 0x460   :  { %v2022_v8 = vadd.f32 %v2021_v5, %v2020_v1  ;;  %v1353_v5 = vpack.c.bf16 %v1172_v36, %v1171_v49  ;;  %v1522_v39 = vrot.slane %v1518_v37, %v2611_v59 }
 0x461   :  { %v2023_v30 = vpop.f32.mrf.mxu0 }
 0x462   :  { %v996_v45 = vadd.f32 %v2022_v8, %v2820_v56  ;;  %2139 = vmatmul.mubr.msk.bf16.vlgmr.msra.gmra.mxu0 %vm210_vm1, %v1353_v5 }
 0x463   :  { %v2024_v10 = vpop.f32.mrf.mxu0  ;;  %2168 = vmatprep.mubr.msk.bf16.mxu0 %vm2300_vm3, %v2299_v9  ;;  %2157 = vmatpush3.bf16.msra.mxu0 %v2279_v26 }
 0x464   :  { %v2025_v43 = vadd.f32 %v2024_v10, %v2023_v30  ;;  %2158 = vmatprep.subr.bf16.mxu0 %v2299_v9 }
 0x465   :  { %v2026_v11 = vpop.f32.mrf.mxu0 }
 0x466   :  { %v999_v12 = vadd.f32 %v2025_v43, %v2820_v56 }
 0x467   :  { %v2027_v15 = vpop.f32.mrf.mxu0 }
 0x468   :  { %v2193_v17 = vpack.i.bf16 %v999_v12, %v996_v45  ;;  %v2028_v58 = vadd.f32 %v2027_v15, %v2026_v11 }
 0x469   :  { %v2029_v53 = vpop.f32.mrf.mxu0 }
 0x46a   :  { %2194 = vrot.lane.b32.xlu1 %v2193_v17, %s2301_s29  ;;  %v1004_v0 = vadd.f32 %v2028_v58, %v2820_v56  ;;  %v2274_v58 = vld [vmem:[%s3017_s2 + $0x98] sm:$0xff]  }
 0x46b   :  { %v2030_v19 = vpop.f32.mrf.mxu0 }
 0x46c   :  { %v2031_v62 = vadd.f32 %v2030_v19, %v2029_v53  ;;  %v2277_v19 = vld [vmem:[%s3017_s2 + $0x80] sm:$0xff]  }
 0x46d   :  { %v2032_v63 = vpop.f32.mrf.mxu0 }
 0x46e   :  { %v1007_v2 = vadd.f32 %v2031_v62, %v2820_v56  ;;  %v33_v62 = vld [vmem:[%s3014_s0 + $0x60] sm:$0xff] }
 0x46f   :  { %v2033_v21 = vpop.f32.mrf.mxu0 }
 0x470   :  { %v2198_v23 = vpack.i.bf16 %v1007_v2, %v1004_v0  ;;  %v2034_v34 = vadd.f32 %v2033_v21, %v2032_v63  ;;  %v1440_v63 = vpack.c.bf16 %v34_v25, %v33_v62  ;;  %v1527_v62 = vld [vmem:[%s3017_s2 + $0xb0] sm:$0x1] }
 0x471   :  { %v2035_v52 = vpop.f32.mrf.mxu0 }
 0x472   :  { %2199 = vrot.lane.b32.xlu1 %v2198_v23, %s2302_s11  ;;  %v1012_v31 = vadd.f32 %v2034_v34, %v2820_v56  ;;  %v1262_v0 = vpop.f32.mrf.mxu1  ;;  %v2280_v34 = vld [vmem:[%s3016_s4 + $0x120] sm:$0xff]  }
 0x473   :  { %v2036_v38 = vpop.f32.mrf.mxu0  ;;  %2159 = vmatpush3.bf16.msra.mxu0 %v2280_v34 }
 0x474   :  { %v2037_v55 = vadd.f32 %v2036_v38, %v2035_v52  ;;  %v2112_v2 = vpop.f32.mrf.mxu1  ;;  %v2281_v38 = vld [vmem:[%s3016_s4 + $0x118] sm:$0xff]   ;;  %2160 = vmatprep.subr.bf16.mxu0 %v2299_v9 }
 0x475   :  { %v2038_v29 = vpop.f32.mrf.mxu0 }
 0x476   :  { %v1015_v42 = vadd.f32 %v2037_v55, %v2820_v56  ;;  %v1265_v21 = vpop.f32.mrf.mxu1  ;;  %v2282_v55 = vld [vmem:[%s3016_s4 + $0x110] sm:$0xff]  }
 0x477   :  { %v2039_v32 = vpop.f32.mrf.mxu0  ;;  %2161 = vmatpush3.bf16.msra.mxu0 %v2281_v38 }
 0x478   :  { %v2203_v35 = vpack.i.bf16 %v1015_v42, %v1012_v31  ;;  %v2040_v47 = vadd.f32 %v2039_v32, %v2038_v29  ;;  %v2113_v22 = vpop.f32.mrf.mxu1  ;;  %2162 = vmatprep.subr.bf16.mxu0 %v2299_v9  ;;  %v2283_v29 = vld [vmem:[%s3016_s4 + $0x108] sm:$0xff]  }
 0x479   :  { %v2041_v24 = vpop.f32.mrf.mxu0 }
 0x47a   :  { %2204 = vrot.lane.b32.xlu0 %v2203_v35, %s2303_s16  ;;  %v1020_v27 = vadd.f32 %v2040_v47, %v2820_v56 }
 0x47b   :  { %v2042_v41 = vpop.f32.mrf.mxu0  ;;  %2163 = vmatpush3.bf16.msra.mxu0 %v2282_v55 }
 0x47c   :  { %v2043_v14 = vadd.f32 %v2042_v41, %v2041_v24  ;;  %2164 = vmatprep.subr.bf16.mxu0 %v2299_v9 }
 0x47e   :  { %v1023_v1 = vadd.f32 %v2043_v14, %v2820_v56 }
 0x47f   :  { %2165 = vmatpush3.bf16.msra.mxu0 %v2283_v29 }
 0x480   :  { %v2208_v6 = vpack.i.bf16 %v1023_v1, %v1020_v27  ;;  %2166 = vmatprep.subr.bf16.mxu0 %v2299_v9 }
 0x482   :  { %2209 = vrot.lane.b32.xlu1 %v2208_v6, %s2304_s17 }
 0x483   :  { %2167 = vmatpush3.bf16.msra.mxu0 %v2284_v40 }
 0x484   :  { %2180 = vmatprep.subr.bf16.mxu0 %v2299_v9 }
 0x4dc   :  { %v2195_v57 = vpop.permute.xlu1 %2194 }
 0x4dd   :  { %v2197_v7 = vunpack.i.h.bf16 %v2195_v57  ;;  %v2196_v8 = vunpack.i.l.bf16 %v2195_v57 }
 0x4df   :  { %v1058_v56 = vsel %vm539_vm2, %v2823_v3, %v2196_v8  ;;  %v1059_v12 = vsel %vm539_vm2, %v2826_v4, %v2197_v7  ;;  %v2275_v4 = vld [vmem:[%s3017_s2 + $0x90] sm:$0xff]  }
 0x4e4   :  { %v2200_v20 = vpop.permute.xlu1 %2199 }
 0x4e5   :  { %v2202_v10 = vunpack.i.h.bf16 %v2200_v20  ;;  %v2201_v43 = vunpack.i.l.bf16 %v2200_v20 }
 0x4e7   :  { %v1060_v46 = vsel %vm66_vm0, %v1058_v56, %v2201_v43  ;;  %v1061_v48 = vsel %vm66_vm0, %v1059_v12, %v2202_v10 }
 0x4ec   :  { %v2205_v30 = vpop.permute.xlu0 %2204 }
 0x4ed   :  { %v2207_v11 = vunpack.i.h.bf16 %v2205_v30  ;;  %v2206_v45 = vunpack.i.l.bf16 %v2205_v30 }
 0x4ef   :  { %v1063_v18 = vsel %vm1062_vm12, %v1060_v46, %v2206_v45  ;;  %v1064_v51 = vsel %vm1062_vm12, %v1061_v48, %v2207_v11 }
 0x4f4   :  { %v2210_v15 = vpop.permute.xlu1 %2209 }
 0x4f5   :  { %v2212_v16 = vunpack.i.h.bf16 %v2210_v15  ;;  %v2211_v17 = vunpack.i.l.bf16 %v2210_v15 }
 0x4f7   :  { %v1066_v53 = vsel %vm1065_vm13, %v1063_v18, %v2211_v17  ;;  %v1067_v54 = vsel %vm1065_vm13, %v1064_v51, %v2212_v16 }
 0x4f8   :  { %v1183_v3 = vpack.c.bf16 %v1067_v54, %v1066_v53 }
 0x4fa   :  { %2125 = vmatmul.mubr.msk.bf16.vlgmr.msra.gmra.mxu1 %vm210_vm1, %v1183_v3 }
 0x4fb   :  { %2143 = vmatpush3.bf16.msra.mxu1 %v2274_v58  ;;  %2152 = vmatprep.mubr.msk.bf16.mxu1 %vm2300_vm3, %v2299_v9 }
 0x4fc   :  { %2144 = vmatprep.subr.bf16.mxu1 %v2299_v9 }
 0x4ff   :  { %2145 = vmatpush3.bf16.msra.mxu1 %v2275_v4 }
 0x500   :  { %2146 = vmatprep.subr.bf16.mxu1 %v2299_v9 }
 0x503   :  { %2147 = vmatpush3.bf16.msra.mxu1 %v2276_v60 }
 0x504   :  { %2148 = vmatprep.subr.bf16.mxu1 %v2299_v9 }
 0x507   :  { %2149 = vmatpush3.bf16.msra.mxu1 %v2277_v19 }
 0x508   :  { %2150 = vmatprep.subr.bf16.mxu1 %v2299_v9 }
 0x50b   :  { %2151 = vmatpush3.bf16.msra.mxu1 %v2278_v61  ;;  %v1525_v61 = vld [vmem:[%s3017_s2 + $0xa8] sm:$0x1] }
 0x50c   :  { %2172 = vmatprep.subr.bf16.mxu1 %v2299_v9  ;;  %v1526_v25 = vunpack.c.l.bf16 %v1525_v61 }
 0x50e   :  { %2153 = vmatmul.mubr.msk.bf16.vlgmr.msra.gmra.mxu1 %vm210_vm1, %v1440_v63  ;;  %vm1529_vm1 = vcmask 785408   ;;  %v1528_v63 = vunpack.c.l.bf16 %v1527_v62 }
 0x50f   :  { %2176 = vmatprep.mubr.msk.bf16.mxu1 %vm2300_vm3, %v2299_v9 }
 0x522   :  { %v1421_v50 = vpop.f32.mrf.mxu0 }
 0x524   :  { %v2140_v23 = vpop.f32.mrf.mxu0 }
 0x526   :  { %v1424_v52 = vpop.f32.mrf.mxu0 }
 0x528   :  { %v2141_v28 = vpop.f32.mrf.mxu0 }
 0x5ba   :  { %v1336_v31 = vpop.f32.mrf.mxu1 }
 0x5bb   :  { %v1337_v35 = vadd.f32 %v1336_v31, %v1262_v0  ;;  %v1562_v0 = vrot.slane %v1526_v25, %v2611_v59  ;;  %v2285_v31 = vld [vmem:[%s3016_s4 + $0x138] sm:$0xff]  }
 0x5bc   :  { %v2126_v42 = vpop.f32.mrf.mxu1  ;;  %2173 = vmatpush3.bf16.msra.mxu1 %v2285_v31 }
 0x5bd   :  { %v1428_v13 = vadd.f32 %v1421_v50, %v1337_v35  ;;  %v1568_v50 = vrot.slane %v1528_v63, %v2611_v59  ;;  %v2286_v42 = vld [vmem:[%s3016_s4 + $0x130] sm:$0xff]   ;;  %2174 = vmatprep.subr.bf16.mxu1 %v2299_v9 }
 0x5be   :  { %v1339_v44 = vpop.f32.mrf.mxu1 }
 0x5bf   :  { %v1340_v24 = vadd.f32 %v1339_v44, %v1265_v21  ;;  %v1590_v44 = vld [vmem:[%s3016_s4 + $0x160] sm:$0x1] }
 0x5c0   :  { %v2127_v32 = vpop.f32.mrf.mxu1  ;;  %2175 = vmatpush3.bf16.msra.mxu1 %v2286_v42 }
 0x5c1   :  { %v1429_v14 = vadd.f32 %v1424_v52, %v1340_v24  ;;  %v1591_v32 = vunpack.c.l.bf16 %v1590_v44 }
 0x5c3   :  { %v1595_v33 = vrot.slane %v1591_v32, %v2611_v59 }
 0x5ce   :  { %v1508_v47 = vpop.f32.mrf.mxu1 }
 0x5cf   :  { %v1515_v49 = vadd.f32 %v1508_v47, %v1428_v13 }
 0x5d0   :  { %v2154_v41 = vpop.f32.mrf.mxu1 }
 0x5d1   :  { %v1523_v27 = vadd.f32 %v1522_v39, %v1515_v49 }
 0x5d2   :  { %v1511_v36 = vpop.f32.mrf.mxu1 }
 0x5d3   :  { %v1516_v1 = vadd.f32 %v1511_v36, %v1429_v14  ;;  %v1530_v57 = vsel %vm1529_vm1, %v1523_v27, 0.0 }
 0x5d4   :  { %v2155_v5 = vpop.f32.mrf.mxu1 }
 0x5d5   :  { %v1524_v6 = vadd.f32 %v1522_v39, %v1516_v1 }
 0x5d7   :  { %v1531_v20 = vsel %vm1529_vm1, %v1524_v6, 0.0 }
 0x5d8   :  { %v1532_v30 = vadd.f32 %v1531_v20, %v1530_v57 }
 0x5da   :  { %v1533_v7 = vrot.slane %v1532_v30, 4 }
 0x5dc   :  { %v1534_v8 = vadd.f32 %v1533_v7, %v1532_v30 }
 0x5de   :  { %v1535_v10 = vrot.slane %v1534_v8, 2 }
 0x5e0   :  { %v1536_v43 = vadd.f32 %v1535_v10, %v1534_v8 }
 0x5e2   :  { %v1537_v11 = vrot.slane %v1536_v43, 1 }
 0x5e4   :  { %v1538_v45 = vadd.f32 %v1537_v11, %v1536_v43 }
 0x5e6   :  { %v1540_v56 = vmul.f32 0.0625, %v1538_v45 }
 0x5e8   :  { %v1541_v12 = vsub.f32 %v1523_v27, %v1540_v56  ;;  %v1542_v15 = vsub.f32 %v1524_v6, %v1540_v56 }
 0x5ea   :  { %v1543_v46 = vmul.f32 %v1541_v12, %v1541_v12  ;;  %v1544_v48 = vmul.f32 %v1542_v15, %v1542_v15 }
 0x5ec   :  { %v1545_v16 = vsel %vm1529_vm1, %v1543_v46, 0.0  ;;  %v1546_v17 = vsel %vm1529_vm1, %v1544_v48, 0.0 }
 0x5ed   :  { %v1547_v18 = vadd.f32 %v1546_v17, %v1545_v16 }
 0x5ef   :  { %v1548_v51 = vrot.slane %v1547_v18, 4 }
 0x5f1   :  { %v1549_v53 = vadd.f32 %v1548_v51, %v1547_v18 }
 0x5f3   :  { %v1550_v54 = vrot.slane %v1549_v53, 2 }
 0x5f5   :  { %v1551_v58 = vadd.f32 %v1550_v54, %v1549_v53 }
 0x5f7   :  { %v1552_v3 = vrot.slane %v1551_v58, 1 }
 0x5f9   :  { %v1553_v4 = vadd.f32 %v1552_v3, %v1551_v58  ;;  %v1682_v58 = vld [vmem:[%s3016_s4 + $0x168] sm:$0x1]  ;;  %v1684_v3 = vld [vmem:[%s3016_s4 + $0x170] sm:$0x1] }
 0x5fb   :  { %v1554_v60 = vmul.f32 0.0625, %v1553_v4  ;;  %v1683_v4 = vunpack.c.l.bf16 %v1682_v58 }
 0x5fd   :  { %v1555_v19 = vadd.f32 1e-05, %v1554_v60  ;;  %v1685_v60 = vunpack.c.l.bf16 %v1684_v3 }
 0x5ff   :  { %2294 = vrsqrt.f32 %v1555_v19  ;;  %v1717_v19 = vrot.slane %v1683_v4, %v2611_v59  ;;  %v1723_v63 = vrot.slane %v1685_v60, %v2611_v59 }
 0x60c   :  { %v2295_v2 = vpop.eup %2294 }
 0x60d   :  { %v1557_v21 = vmul.f32 %v2295_v2, %v1541_v12  ;;  %v1558_v22 = vmul.f32 %v2295_v2, %v1542_v15 }
 0x60f   :  { %v1563_v23 = vmul.f32 %v1562_v0, %v1557_v21  ;;  %v1564_v52 = vmul.f32 %v1562_v0, %v1558_v22 }
 0x611   :  { %v1569_v28 = vadd.f32 %v1568_v50, %v1563_v23  ;;  %v1570_v26 = vadd.f32 %v1568_v50, %v1564_v52  ;;  %v2287_v23 = vld [vmem:[%s3016_s4 + $0x140] sm:$0xff]   ;;  %v1731_v52 = vld [vmem:[%s3016_s4 + $0x178] sm:$0x1] }
 0x613   :  { %vm1572_vm14 = vcmp.gt.f32.partialorder %v1570_v26, 0.0  ;;  %v1574_v34 = vmul.f32 0.01, %v1570_v26  ;;  %vm1571_vm15 = vcmp.gt.f32.partialorder %v1569_v28, 0.0  ;;  %v1573_v38 = vmul.f32 0.01, %v1569_v28 }
 0x615   :  { %v1575_v55 = vsel %vm1571_vm15, %v1569_v28, %v1573_v38  ;;  %v1576_v29 = vsel %vm1572_vm14, %v1570_v26, %v1574_v34  ;;  %v1732_v28 = vunpack.c.l.bf16 %v1731_v52 }
 0x616   :  { %v1589_v40 = vpack.c.bf16 %v1576_v29, %v1575_v55 }
 0x617   :  { %v1736_v26 = vrot.slane %v1732_v28, %v2611_v59 }
 0x618   :  { %2169 = vmatmul.mubr.msk.bf16.vlgmr.msra.gmra.mxu0 %vm1529_vm1, %v1589_v40 }
 0x619   :  { %2182 = vmatprep.mubr.msk.bf16.mxu0 %vm2300_vm3, %v2299_v9  ;;  %2181 = vmatpush3.bf16.msra.mxu0 %v2287_v23 }
 0x6d8   :  { %v1669_v35 = vpop.f32.mrf.mxu0 }
 0x6d9   :  { %v1670_v37 = vadd.f32 %v1669_v35, %v1595_v33 }
 0x6da   :  { %v2170_v13 = vpop.f32.mrf.mxu0 }
 0x6db   :  { %v1678_v24 = vmul.f32 0.01, %v1670_v37  ;;  %vm1676_vm3 = vcmp.gt.f32.partialorder %v1670_v37, 0.0 }
 0x6dc   :  { %v1672_v47 = vpop.f32.mrf.mxu0 }
 0x6dd   :  { %v1673_v49 = vadd.f32 %v1672_v47, %v1595_v33  ;;  %v1680_v41 = vsel %vm1676_vm3, %v1670_v37, %v1678_v24  ;;  %v1802_v37 = vld [vmem:[%s3016_s4 + $0x180] sm:$0x1] }
 0x6de   :  { %v2171_v39 = vpop.f32.mrf.mxu0  ;;  %v1686_v36 = vsel %vm66_vm0, %v1680_v41, 0.0  ;;  %v1803_v13 = vunpack.c.l.bf16 %v1802_v37 }
 0x6df   :  { %vm1677_vm4 = vcmp.gt.f32.partialorder %v1673_v49, 0.0  ;;  %v1679_v14 = vmul.f32 0.01, %v1673_v49 }
 0x6e0   :  { %v1807_v24 = vrot.slane %v1803_v13, %v2611_v59 }
 0x6e1   :  { %v1681_v9 = vsel %vm1677_vm4, %v1673_v49, %v1679_v14 }
 0x6e2   :  { %v1687_v27 = vsel %vm66_vm0, %v1681_v9, 0.0 }
 0x6e3   :  { %v1688_v1 = vadd.f32 %v1687_v27, %v1686_v36 }
 0x6e5   :  { %v1689_v5 = vrot.slane %v1688_v1, 4 }
 0x6e7   :  { %v1690_v6 = vadd.f32 %v1689_v5, %v1688_v1 }
 0x6e9   :  { %v1691_v57 = vrot.slane %v1690_v6, 2 }
 0x6eb   :  { %v1692_v20 = vadd.f32 %v1691_v57, %v1690_v6 }
 0x6ed   :  { %v1693_v30 = vrot.slane %v1692_v20, 1 }
 0x6ef   :  { %v1694_v7 = vadd.f32 %v1693_v30, %v1692_v20 }
 0x6f1   :  { %v1695_v8 = vmul.f32 0.0625, %v1694_v7 }
 0x6f3   :  { %v1696_v10 = vsub.f32 %v1680_v41, %v1695_v8  ;;  %v1697_v43 = vsub.f32 %v1681_v9, %v1695_v8 }
 0x6f5   :  { %v1698_v11 = vmul.f32 %v1696_v10, %v1696_v10  ;;  %v1699_v45 = vmul.f32 %v1697_v43, %v1697_v43 }
 0x6f7   :  { %v1700_v56 = vsel %vm66_vm0, %v1698_v11, 0.0  ;;  %v1701_v12 = vsel %vm66_vm0, %v1699_v45, 0.0 }
 0x6f8   :  { %v1702_v15 = vadd.f32 %v1701_v12, %v1700_v56 }
 0x6fa   :  { %v1703_v46 = vrot.slane %v1702_v15, 4 }
 0x6fc   :  { %v1704_v48 = vadd.f32 %v1703_v46, %v1702_v15 }
 0x6fe   :  { %v1705_v16 = vrot.slane %v1704_v48, 2 }
 0x700   :  { %v1706_v17 = vadd.f32 %v1705_v16, %v1704_v48 }
 0x702   :  { %v1707_v18 = vrot.slane %v1706_v17, 1 }
 0x704   :  { %v1708_v51 = vadd.f32 %v1707_v18, %v1706_v17 }
 0x706   :  { %v1709_v53 = vmul.f32 0.0625, %v1708_v51 }
 0x708   :  { %v1710_v54 = vadd.f32 1e-05, %v1709_v53 }
 0x70a   :  { %2296 = vrsqrt.f32 %v1710_v54 }
 0x717   :  { %v2297_v61 = vpop.eup %2296 }
 0x718   :  { %v1712_v62 = vmul.f32 %v2297_v61, %v1696_v10  ;;  %v1713_v25 = vmul.f32 %v2297_v61, %v1697_v43 }
 0x71a   :  { %v1718_v0 = vmul.f32 %v1717_v19, %v1712_v62  ;;  %v1719_v2 = vmul.f32 %v1717_v19, %v1713_v25 }
 0x71c   :  { %v1725_v21 = vadd.f32 %v1723_v63, %v1719_v2  ;;  %v1724_v22 = vadd.f32 %v1723_v63, %v1718_v0 }
 0x71e   :  { %v1730_v50 = vpack.c.bf16 %v1725_v21, %v1724_v22 }
 0x720   :  { %2177 = vmatmul.mubr.msk.bf16.vlgmr.msra.gmra.mxu1 %vm66_vm0, %v1730_v50 }
 0x7e0   :  { %v1786_v34 = vpop.f32.mrf.mxu1 }
 0x7e1   :  { %v1787_v38 = vadd.f32 %v1786_v34, %v1736_v26 }
 0x7e2   :  { %v2178_v55 = vpop.f32.mrf.mxu1 }
 0x7e3   :  { %v1795_v40 = vmul.f32 0.01, %v1787_v38  ;;  %vm1793_vm5 = vcmp.gt.f32.partialorder %v1787_v38, 0.0 }
 0x7e4   :  { %v1789_v29 = vpop.f32.mrf.mxu1 }
 0x7e5   :  { %v1790_v31 = vadd.f32 %v1789_v29, %v1736_v26  ;;  %v1797_v32 = vsel %vm1793_vm5, %v1787_v38, %v1795_v40 }
 0x7e6   :  { %v2179_v42 = vpop.f32.mrf.mxu1 }
 0x7e7   :  { %vm1794_vm0 = vcmp.gt.f32.partialorder %v1790_v31, 0.0  ;;  %v1796_v44 = vmul.f32 0.01, %v1790_v31 }
 0x7e9   :  { %v1798_v33 = vsel %vm1794_vm0, %v1790_v31, %v1796_v44 }
 0x7ea   :  { %v1801_v35 = vpack.c.bf16 %v1798_v33, %v1797_v32 }
 0x7ec   :  { %2183 = vmatmul.mubr.msk.bf16.vlgmr.msra.gmra.mxu0 %vm539_vm2, %v1801_v35 }
 0x8ac   :  { %v1851_v47 = vpop.f32.mrf.mxu0 }
 0x8ad   :  { %v1852_v49 = vadd.f32 %v1851_v47, %v1807_v24 }
 0x8ae   :  { %v2184_v39 = vpop.f32.mrf.mxu0 }
 0x8af   :  { %1859 = vst.msk [vmem:[%s3018_s5] sm:$0xff] %vm1858_vm6, %v1852_v49 }
 0x8b0   :  { %v1854_v41 = vpop.f32.mrf.mxu0 }
 0x8b1   :  { %v1855_v14 = vadd.f32 %v1854_v41, %v1807_v24 }
 0x8b2   :  { %v2185_v9 = vpop.f32.mrf.mxu0 }
 0x8b3   :  { %1860 = vst.msk [vmem:[%s3018_s5 + $0x8] sm:$0xff] %vm1858_vm6, %v1855_v14 }

</bundles_post_ra>
